<compile_context>
chip_gen: v6e
topology: v6e:2x2x1
jax: 0.10.0
libtpu: 0.0.40
codegen_flags: <defaults>
</compile_context>

<pallas_src>
import functools

import jax
import jax.numpy as jnp
from jax import lax
from jax.experimental import pallas as pl
from jax.experimental.pallas import tpu as pltpu

BN_EPS = 1e-5
HIDDEN_DIMS = {"c1": 10, "c3": 20, "c5": 100, "f6": 25}
_K = 5  # conv kernel size (both convs)


# ---------------------------------------------------------------------------
# Kernel
# ---------------------------------------------------------------------------
def _lenet_kernel(layer, n, c1n, c2n, x6_ref, t1_ref, ms_ref, vec_ref, out_ref):
    """Whole LeNet forward in one program.

    x6_ref : (N*12, 6*28)   bf16  6 input rows feeding each pooled conv1 row
    t1_ref : (6*28, 4*c1n*12) bf16  conv1 weight, cols = (ph, pw, c, j)
    ms_ref : (600+320+256, 160) bf16  [conv2 Toeplitz | W5 | W6 | W7] packed
    vec_ref: (10, 512) f32  packed biases / folded BN / expanded switch
    out_ref: (N, 128)  f32  lane-dense logits (cols >= 10 are zero)
    """
    f32, bf16 = jnp.float32, jnp.bfloat16
    hp1 = x6_ref.shape[0] // n            # 12  (rows after pool1)
    h2 = hp1 - (_K - 1)                   # 8   (conv2 spatial out)
    hp2 = h2 // 2                         # 4   (after pool2)
    l1 = c1n * hp1                        # 120 lanes: (c, pooled w)
    l2 = c2n * hp2                        # 80

    vec = vec_ref[...]
    b1e = vec[0:1, :4 * l1]
    s1e = vec[1:2, :l1]
    t1e = vec[2:3, :l1]
    b3e = vec[3:4, :2 * l2]
    s2e = vec[4:5, :l2]
    t2e = vec[5:6, :l2]
    b5 = vec[6:7, :128]
    b6 = vec[7:8, :128]
    b7 = vec[8:9, :128]

    # ---- c1: 5x5 conv at all four 2x2-pool positions == ONE MXU matmul ----
    a1 = jnp.dot(x6_ref[...], t1_ref[...], preferred_element_type=f32)  # (N*12, 480)
    a1 = a1 + b1e
    if layer == "c1":
        a1 = a1 * vec[9:10, :4 * l1]      # per-channel switch, pre-expanded

    # ---- s2: 2x2 max pool == three lane-slab maxima; relu; folded bn1 -----
    p = jnp.maximum(jnp.maximum(a1[:, 0 * l1:1 * l1], a1[:, 1 * l1:2 * l1]),
                    jnp.maximum(a1[:, 2 * l1:3 * l1], a1[:, 3 * l1:4 * l1]))
    p = jnp.maximum(p, 0.0) * s1e + t1e   # (N*12, 120)
    # TODO(synk): Dropout(p=0.5) and BatchNorm use eval/inference semantics
    # (dropout = identity, BN running stats folded into scale/shift).

    # ---- c3: lane-concat the 5 kh-shifted slices -> ONE K=600 matmul ------
    p3 = p.reshape(n, hp1, l1)
    xc = jnp.concatenate([p3[:, kh:kh + h2, :] for kh in range(_K)], axis=-1)
    xc = xc.reshape(n * h2, _K * l1).astype(bf16)                       # (N*8, 600)
    t3 = ms_ref[0:_K * l1, 0:2 * l2]
    a3 = jnp.dot(xc, t3, preferred_element_type=f32)                    # (N*8, 160)
    a3 = a3 + b3e
    if layer == "c3":
        a3 = a3 * vec[9:10, :2 * l2]

    # ---- s4: pool W via lane halves, pool H via adjacent rows; relu; bn2 --
    m3 = jnp.maximum(a3[:, :l2], a3[:, l2:])                            # (N*8, 80)
    q = jnp.max(m3.reshape(n * hp2, 2, l2), axis=1)                     # (N*4, 80)
    q = jnp.maximum(q, 0.0) * s2e + t2e

    # ---- flatten each image to (h, c, w) feature order via lane concat ----
    q3 = q.reshape(n, hp2, l2)
    qf = jnp.concatenate([q3[:, i, :] for i in range(hp2)], axis=-1)    # (N, 320)

    # ---- c5 / f6 / f7: three dense matmuls on 128-lane padded weights -----
    r5 = _K * l1
    r6 = r5 + hp2 * l2
    r7 = r6 + 128
    w5 = ms_ref[r5:r6, 0:128]
    w6 = ms_ref[r6:r7, 0:128]
    w7 = ms_ref[r7:r7 + 128, 0:128]
    h5 = jnp.dot(qf.astype(bf16), w5, preferred_element_type=f32) + b5
    if layer == "c5":
        h5 = h5 * vec[9:10, :128]
    h6 = jnp.dot(h5.astype(bf16), w6, preferred_element_type=f32) + b6
    if layer == "f6":
        h6 = h6 * vec[9:10, :128]
    out_ref[...] = jnp.dot(h6.astype(bf16), w7, preferred_element_type=f32) + b7


# ---------------------------------------------------------------------------
# Wrapper-side weight / layout preprocessing (pure glue, runs once per call)
# ---------------------------------------------------------------------------
def _conv1_pool_weight(w, h_in):
    """(C,1,K,K) conv1 weight -> ((K+1)*h_in, 4*C*(w_out//2)) matrix.

    Rows index (d, wi): d = local input row (0..K) inside a pooled-row window,
    wi = input column.  Cols index (ph, pw, c, j): the 2x2 pool parities,
    channel and pooled output column, so one matmul evaluates the conv at all
    four positions of every pool window of a pooled output row.
    """
    c = w.shape[0]
    k = w.shape[-1]
    jn = (h_in - k + 1) // 2
    d = jnp.arange(k + 1)
    oh = (d[:, None, None] - jnp.arange(2)[None, :, None]
          == jnp.arange(k)[None, None, :]).astype(w.dtype)            # (K+1, 2, K)
    wi = jnp.arange(h_in)
    ow = (wi[:, None, None, None]
          - (2 * jnp.arange(jn)[None, None, :, None]
             + jnp.arange(2)[None, :, None, None])
          == jnp.arange(k)[None, None, None, :]).astype(w.dtype)      # (h_in, 2, jn, K)
    t = jnp.einsum("dpa,wqjb,cab->dwpqcj", oh, ow, w[:, 0])
    return t.reshape((k + 1) * h_in, 4 * c * jn)


def _toeplitz_conv_weight(w, w_in):
    """(Cout,Cin,KH,KW) conv weight -> (KH, Cin*w_in, 2*Cout*(w_out//2)).

    Column order is (w_parity, cout, j) so the 2x2 pool's W-halves are the two
    lane halves of the matmul result.
    """
    cout, cin, kh, kw = w.shape
    w_out = w_in - kw + 1
    wi = jnp.arange(w_in)
    wo = jnp.arange(w_out)
    taps = jnp.arange(kw)
    onehot = (wi[:, None, None] - wo[None, :, None] == taps[None, None, :]).astype(w.dtype)
    t = jnp.einsum("iok,uchk->hciuo", onehot, w)          # (KH, Cin, w_in, Cout, w_out)
    t = t.reshape(kh, cin, w_in, cout, w_out // 2, 2)
    t = jnp.transpose(t, (0, 1, 2, 5, 3, 4))              # (KH, Cin, w_in, 2, Cout, j)
    return t.reshape(kh, cin * w_in, 2 * cout * (w_out // 2))


def lenet_forward(x_nchw, params, layer):
    """x_nchw: (N, 1, 28, 28) float32. Returns (logits (N, 10), switch (K,))."""
    (W1, b1, g1, be1, m1, v1, W3, b3, g2, be2, m2, v2,
     W5, b5, W6, b6, W7, b7, psw) = params
    f32, bf16 = jnp.float32, jnp.bfloat16
    n, _, h_in, _ = x_nchw.shape
    c1n, c2n = W1.shape[0], W3.shape[0]
    nfc1, nfc2, nout = W5.shape[0], W6.shape[0], W7.shape[0]
    assert nfc1 <= 128 and nfc2 <= 128 and nout <= 128
    h1 = h_in - (_K - 1); hp1 = h1 // 2          # 24, 12
    h2 = hp1 - (_K - 1); hp2 = h2 // 2           # 8, 4
    l1 = c1n * hp1; l2 = c2n * hp2               # 120, 80
    assert hp2 * l2 == W5.shape[1]

    # switch = softmax(parameter_switch); it does not depend on x -> hoisted.
    sw = jax.nn.softmax(psw.astype(f32), axis=0)

    # Activations: per pooled conv1 output row, gather the 6 input rows.
    x3 = x_nchw.astype(f32).reshape(n, h_in, h_in)
    ridx = 2 * jnp.arange(hp1)[:, None] + jnp.arange(_K + 1)[None, :]
    x6 = x3[:, ridx, :].reshape(n * hp1, (_K + 1) * h_in).astype(bf16)  # (24, 168)

    # conv1 weight with both pool parities folded into output lanes.
    t1 = _conv1_pool_weight(W1.astype(f32), h_in).astype(bf16)          # (168, 480)

    # One packed bf16 slab: conv2 Toeplitz (K-major) + the three FC weights.
    t3 = _toeplitz_conv_weight(W3.astype(f32), hp1).reshape(_K * l1, 2 * l2)
    w5r = jnp.transpose(W5.astype(f32).reshape(nfc1, c2n, hp2, hp2),
                        (2, 1, 3, 0)).reshape(hp2 * l2, nfc1)            # (320, 100)
    wide = max(2 * l2, 128)

    def pad_block(a, rows):
        return jnp.pad(a, ((0, rows - a.shape[0]), (0, wide - a.shape[1])))

    mslab = jnp.concatenate(
        [pad_block(t3, _K * l1),
         pad_block(w5r, hp2 * l2),
         pad_block(W6.astype(f32).T, 128),
         pad_block(W7.astype(f32).T, 128)], axis=0).astype(bf16)         # (1176, 160)

    # Fold BN into scale/shift; pack all small vectors into one f32 array.
    scale1 = g1 / jnp.sqrt(v1 + BN_EPS); shift1 = be1 - m1 * scale1
    scale2 = g2 / jnp.sqrt(v2 + BN_EPS); shift2 = be2 - m2 * scale2
    if layer == "c1":
        sw_row = jnp.tile(jnp.repeat(sw, hp1), 4)        # (ph, pw, c, j) order
    elif layer == "c3":
        sw_row = jnp.tile(jnp.repeat(sw, hp2), 2)        # (pw, c, j) order
    elif layer in ("c5", "f6"):
        sw_row = sw
    else:
        sw_row = jnp.zeros((1,), f32)
    rows = [jnp.tile(jnp.repeat(b1, hp1), 4),
            jnp.repeat(scale1, hp1), jnp.repeat(shift1, hp1),
            jnp.tile(jnp.repeat(b3, hp2), 2),
            jnp.repeat(scale2, hp2), jnp.repeat(shift2, hp2),
            b5, b6, b7, sw_row]
    width = -(-max(max(int(r.size) for r in rows), 128) // 128) * 128
    vec = jnp.stack([jnp.pad(r.astype(f32).reshape(-1), (0, width - int(r.size)))
                     for r in rows])                                     # (10, 512)

    vmem = pl.BlockSpec(memory_space=pltpu.MemorySpace.VMEM)
    kern = functools.partial(_lenet_kernel, layer, n, c1n, c2n)
    out = pl.pallas_call(
        kern,
        out_shape=jax.ShapeDtypeStruct((n, 128), f32),   # lane-dense logits
        in_specs=[vmem] * 4,
        out_specs=vmem,
    )(x6, t1, mslab, vec)
    # TODO(synk): for large N, grid over the batch with
    # dimension_semantics=("parallel",) so both v7x TensorCores are used.
    return out[:, :nout], sw


# ---------------------------------------------------------------------------
# Pure-JAX reference mirroring the PyTorch module (eval semantics)
# ---------------------------------------------------------------------------
def reference_forward(x, params, layer):
    (W1, b1, g1, be1, m1, v1, W3, b3, g2, be2, m2, v2,
     W5, b5, W6, b6, W7, b7, psw) = params
    sw = jax.nn.softmax(psw, axis=0)
    bc = lambda v: v[None, :, None, None]

    def pool2(o):
        nn, cc, hh, ww = o.shape
        return o.reshape(nn, cc, hh // 2, 2, ww // 2, 2).max(axis=(3, 5))

    dn = ("NCHW", "OIHW", "NCHW")
    o = lax.conv_general_dilated(x, W1, (1, 1), "VALID", dimension_numbers=dn) + bc(b1)
    if layer == "c1":
        o = o * bc(sw)
    o = jax.nn.relu(pool2(o))
    o = (o - bc(m1)) / jnp.sqrt(bc(v1) + BN_EPS) * bc(g1) + bc(be1)
    o = lax.conv_general_dilated(o, W3, (1, 1), "VALID", dimension_numbers=dn) + bc(b3)
    if layer == "c3":
        o = o * bc(sw)
    o = jax.nn.relu(pool2(o))
    o = (o - bc(m2)) / jnp.sqrt(bc(v2) + BN_EPS) * bc(g2) + bc(be2)
    o = o.reshape(o.shape[0], -1)          # NCHW flatten, matches .view(-1, C*4*4)
    o = o @ W5.T + b5
    if layer == "c5":
        o = o * sw
    o = o @ W6.T + b6
    if layer == "f6":
        o = o * sw
    o = o @ W7.T + b7
    return o, sw


if __name__ == "__main__":
    key = jax.random.PRNGKey(0)
    ks = jax.random.split(key, 20)
    rnd = lambda k_, shape, s=0.1: s * jax.random.normal(k_, shape, jnp.float32)

    nodes1, nodes2, nfc1, nfc2 = 10, 20, 100, 25   # conv1, conv2, fc1, fc2
    switch_init = 0.05

    W1 = rnd(ks[0], (nodes1, 1, 5, 5));  b1 = rnd(ks[1], (nodes1,))
    g1 = 1.0 + rnd(ks[2], (nodes1,));    be1 = rnd(ks[3], (nodes1,))
    m1 = rnd(ks[4], (nodes1,));          v1 = 1.0 + 0.1 * jax.random.uniform(ks[5], (nodes1,))
    W3 = rnd(ks[6], (nodes2, nodes1, 5, 5)); b3 = rnd(ks[7], (nodes2,))
    g2 = 1.0 + rnd(ks[8], (nodes2,));    be2 = rnd(ks[9], (nodes2,))
    m2 = rnd(ks[10], (nodes2,));         v2 = 1.0 + 0.1 * jax.random.uniform(ks[11], (nodes2,))
    W5 = rnd(ks[12], (nfc1, nodes2 * 4 * 4)); b5 = rnd(ks[13], (nfc1,))
    W6 = rnd(ks[14], (nfc2, nfc1));      b6 = rnd(ks[15], (nfc2,))
    W7 = rnd(ks[16], (10, nfc2));        b7 = rnd(ks[17], (10,))

    x = jax.random.normal(ks[18], (2, 1, 28, 28), jnp.float32)

    for layer in ("c1", "c3", "c5", "f6"):
        psw = switch_init * jnp.ones((HIDDEN_DIMS[layer],), jnp.float32)
        params = (W1, b1, g1, be1, m1, v1, W3, b3, g2, be2, m2, v2,
                  W5, b5, W6, b6, W7, b7, psw)

        logits, switch = lenet_forward(x, params, layer)
        logits, switch = jax.block_until_ready((logits, switch))

        ref_logits, ref_switch = reference_forward(x, params, layer)
        assert logits.shape == (2, 10), f"bad logits shape for {layer}"
        assert switch.shape == (HIDDEN_DIMS[layer],), f"bad switch shape for {layer}"
        assert bool(jnp.all(jnp.isfinite(logits))), f"non-finite logits for {layer}"
        assert bool(jnp.allclose(switch, ref_switch, atol=1e-6, rtol=1e-6)), \
            f"switch mismatch for {layer}"
        assert bool(jnp.allclose(logits, ref_logits, atol=5e-2, rtol=5e-2)), \
            f"logits mismatch for {layer}"

    print("KERNEL_OK")
</pallas_src>

<mosaic_0001>
module attributes {stable_mosaic.version = 11 : i64} {
  func.func @_lenet_kernel(%arg0: memref<24x168xbf16, #tpu.memory_space<vmem>>, %arg1: memref<168x480xbf16, #tpu.memory_space<vmem>>, %arg2: memref<1176x160xbf16, #tpu.memory_space<vmem>>, %arg3: memref<10x512xf32, #tpu.memory_space<vmem>>, %arg4: memref<2x128xf32, #tpu.memory_space<vmem>>) attributes {dimension_semantics = [], scalar_prefetch = 0 : i64, scratch_operands = 0 : i64, tpu.core_type = #tpu.core_type<tc>} {
    %c0 = arith.constant 0 : index
    %c0_0 = arith.constant 0 : index
    %0 = vector.load %arg3[%c0, %c0_0] : memref<10x512xf32, #tpu.memory_space<vmem>>, vector<10x512xf32>
    %1 = vector.extract_strided_slice %0 {offsets = [0, 0], sizes = [1, 480], strides = [1, 1]} : vector<10x512xf32> to vector<1x480xf32>
    %2 = vector.extract_strided_slice %0 {offsets = [1, 0], sizes = [1, 120], strides = [1, 1]} : vector<10x512xf32> to vector<1x120xf32>
    %3 = vector.extract_strided_slice %0 {offsets = [2, 0], sizes = [1, 120], strides = [1, 1]} : vector<10x512xf32> to vector<1x120xf32>
    %4 = vector.extract_strided_slice %0 {offsets = [3, 0], sizes = [1, 160], strides = [1, 1]} : vector<10x512xf32> to vector<1x160xf32>
    %5 = vector.extract_strided_slice %0 {offsets = [4, 0], sizes = [1, 80], strides = [1, 1]} : vector<10x512xf32> to vector<1x80xf32>
    %6 = vector.extract_strided_slice %0 {offsets = [5, 0], sizes = [1, 80], strides = [1, 1]} : vector<10x512xf32> to vector<1x80xf32>
    %7 = vector.extract_strided_slice %0 {offsets = [6, 0], sizes = [1, 128], strides = [1, 1]} : vector<10x512xf32> to vector<1x128xf32>
    %8 = vector.extract_strided_slice %0 {offsets = [7, 0], sizes = [1, 128], strides = [1, 1]} : vector<10x512xf32> to vector<1x128xf32>
    %9 = vector.extract_strided_slice %0 {offsets = [8, 0], sizes = [1, 128], strides = [1, 1]} : vector<10x512xf32> to vector<1x128xf32>
    %c0_1 = arith.constant 0 : index
    %c0_2 = arith.constant 0 : index
    %10 = vector.load %arg0[%c0_1, %c0_2] : memref<24x168xbf16, #tpu.memory_space<vmem>>, vector<24x168xbf16>
    %c0_3 = arith.constant 0 : index
    %c0_4 = arith.constant 0 : index
    %11 = vector.load %arg1[%c0_3, %c0_4] : memref<168x480xbf16, #tpu.memory_space<vmem>>, vector<168x480xbf16>
    %cst = arith.constant dense<0.000000e+00> : vector<24x480xf32>
    %12 = tpu.matmul %10, %11, %cst {dimension_numbers = #tpu.dot_dimension_numbers<[1], [0], [0], [1], [0, 0, 1, 1], [], []>} : vector<24x168xbf16>, vector<168x480xbf16>, vector<24x480xf32> -> vector<24x480xf32>
    %13 = vector.broadcast %1 : vector<1x480xf32> to vector<24x480xf32>
    %14 = arith.addf %12, %13 : vector<24x480xf32>
    %15 = vector.extract_strided_slice %0 {offsets = [9, 0], sizes = [1, 480], strides = [1, 1]} : vector<10x512xf32> to vector<1x480xf32>
    %16 = vector.broadcast %15 : vector<1x480xf32> to vector<24x480xf32>
    %17 = arith.mulf %14, %16 : vector<24x480xf32>
    %18 = vector.extract_strided_slice %17 {offsets = [0, 0], sizes = [24, 120], strides = [1, 1]} : vector<24x480xf32> to vector<24x120xf32>
    %19 = vector.extract_strided_slice %17 {offsets = [0, 120], sizes = [24, 120], strides = [1, 1]} : vector<24x480xf32> to vector<24x120xf32>
    %20 = arith.maximumf %18, %19 : vector<24x120xf32>
    %21 = vector.extract_strided_slice %17 {offsets = [0, 240], sizes = [24, 120], strides = [1, 1]} : vector<24x480xf32> to vector<24x120xf32>
    %22 = vector.extract_strided_slice %17 {offsets = [0, 360], sizes = [24, 120], strides = [1, 1]} : vector<24x480xf32> to vector<24x120xf32>
    %23 = arith.maximumf %21, %22 : vector<24x120xf32>
    %24 = arith.maximumf %20, %23 : vector<24x120xf32>
    %cst_5 = arith.constant 0.000000e+00 : f32
    %25 = vector.broadcast %cst_5 : f32 to vector<24x120xf32>
    %26 = arith.maximumf %24, %25 : vector<24x120xf32>
    %27 = vector.broadcast %2 : vector<1x120xf32> to vector<24x120xf32>
    %28 = arith.mulf %26, %27 : vector<24x120xf32>
    %29 = vector.broadcast %3 : vector<1x120xf32> to vector<24x120xf32>
    %30 = arith.addf %28, %29 : vector<24x120xf32>
    %31 = vector.shape_cast %30 : vector<24x120xf32> to vector<2x12x120xf32>
    %32 = vector.extract_strided_slice %31 {offsets = [0, 0, 0], sizes = [2, 8, 120], strides = [1, 1, 1]} : vector<2x12x120xf32> to vector<2x8x120xf32>
    %33 = vector.extract_strided_slice %31 {offsets = [0, 1, 0], sizes = [2, 8, 120], strides = [1, 1, 1]} : vector<2x12x120xf32> to vector<2x8x120xf32>
    %34 = vector.extract_strided_slice %31 {offsets = [0, 2, 0], sizes = [2, 8, 120], strides = [1, 1, 1]} : vector<2x12x120xf32> to vector<2x8x120xf32>
    %35 = vector.extract_strided_slice %31 {offsets = [0, 3, 0], sizes = [2, 8, 120], strides = [1, 1, 1]} : vector<2x12x120xf32> to vector<2x8x120xf32>
    %36 = vector.extract_strided_slice %31 {offsets = [0, 4, 0], sizes = [2, 8, 120], strides = [1, 1, 1]} : vector<2x12x120xf32> to vector<2x8x120xf32>
    %37 = tpu.concatenate %32, %33, %34, %35, %36 in 2 : vector<2x8x120xf32>, vector<2x8x120xf32>, vector<2x8x120xf32>, vector<2x8x120xf32>, vector<2x8x120xf32> -> vector<2x8x600xf32>
    %38 = vector.shape_cast %37 : vector<2x8x600xf32> to vector<16x600xf32>
    %39 = arith.truncf %38 : vector<16x600xf32> to vector<16x600xbf16>
    %c0_6 = arith.constant 0 : index
    %c0_7 = arith.constant 0 : index
    %40 = vector.load %arg2[%c0_6, %c0_7] : memref<1176x160xbf16, #tpu.memory_space<vmem>>, vector<600x160xbf16>
    %cst_8 = arith.constant dense<0.000000e+00> : vector<16x160xf32>
    %41 = tpu.matmul %39, %40, %cst_8 {dimension_numbers = #tpu.dot_dimension_numbers<[1], [0], [0], [1], [0, 0, 1, 1], [], []>} : vector<16x600xbf16>, vector<600x160xbf16>, vector<16x160xf32> -> vector<16x160xf32>
    %42 = vector.broadcast %4 : vector<1x160xf32> to vector<16x160xf32>
    %43 = arith.addf %41, %42 : vector<16x160xf32>
    %44 = vector.extract_strided_slice %43 {offsets = [0, 0], sizes = [16, 80], strides = [1, 1]} : vector<16x160xf32> to vector<16x80xf32>
    %45 = vector.extract_strided_slice %43 {offsets = [0, 80], sizes = [16, 80], strides = [1, 1]} : vector<16x160xf32> to vector<16x80xf32>
    %46 = arith.maximumf %44, %45 : vector<16x80xf32>
    %47 = vector.shape_cast %46 : vector<16x80xf32> to vector<8x2x80xf32>
    %cst_9 = arith.constant dense<0xFF800000> : vector<8x80xf32>
    %48 = vector.multi_reduction <maximumf>, %47, %cst_9 [1] : vector<8x2x80xf32> to vector<8x80xf32>
    %cst_10 = arith.constant 0.000000e+00 : f32
    %49 = vector.broadcast %cst_10 : f32 to vector<8x80xf32>
    %50 = arith.maximumf %48, %49 : vector<8x80xf32>
    %51 = vector.broadcast %5 : vector<1x80xf32> to vector<8x80xf32>
    %52 = arith.mulf %50, %51 : vector<8x80xf32>
    %53 = vector.broadcast %6 : vector<1x80xf32> to vector<8x80xf32>
    %54 = arith.addf %52, %53 : vector<8x80xf32>
    %55 = vector.shape_cast %54 : vector<8x80xf32> to vector<2x4x80xf32>
    %56 = vector.extract_strided_slice %55 {offsets = [0, 0, 0], sizes = [2, 1, 80], strides = [1, 1, 1]} : vector<2x4x80xf32> to vector<2x1x80xf32>
    %57 = vector.shape_cast %56 : vector<2x1x80xf32> to vector<2x80xf32>
    %58 = vector.extract_strided_slice %55 {offsets = [0, 1, 0], sizes = [2, 1, 80], strides = [1, 1, 1]} : vector<2x4x80xf32> to vector<2x1x80xf32>
    %59 = vector.shape_cast %58 : vector<2x1x80xf32> to vector<2x80xf32>
    %60 = vector.extract_strided_slice %55 {offsets = [0, 2, 0], sizes = [2, 1, 80], strides = [1, 1, 1]} : vector<2x4x80xf32> to vector<2x1x80xf32>
    %61 = vector.shape_cast %60 : vector<2x1x80xf32> to vector<2x80xf32>
    %62 = vector.extract_strided_slice %55 {offsets = [0, 3, 0], sizes = [2, 1, 80], strides = [1, 1, 1]} : vector<2x4x80xf32> to vector<2x1x80xf32>
    %63 = vector.shape_cast %62 : vector<2x1x80xf32> to vector<2x80xf32>
    %64 = tpu.concatenate %57, %59, %61, %63 in 1 : vector<2x80xf32>, vector<2x80xf32>, vector<2x80xf32>, vector<2x80xf32> -> vector<2x320xf32>
    %c600 = arith.constant 600 : index
    %c0_11 = arith.constant 0 : index
    %65 = vector.load %arg2[%c600, %c0_11] : memref<1176x160xbf16, #tpu.memory_space<vmem>>, vector<320x128xbf16>
    %c920 = arith.constant 920 : index
    %c0_12 = arith.constant 0 : index
    %66 = vector.load %arg2[%c920, %c0_12] : memref<1176x160xbf16, #tpu.memory_space<vmem>>, vector<128x128xbf16>
    %c1048 = arith.constant 1048 : index
    %c0_13 = arith.constant 0 : index
    %67 = vector.load %arg2[%c1048, %c0_13] : memref<1176x160xbf16, #tpu.memory_space<vmem>>, vector<128x128xbf16>
    %68 = arith.truncf %64 : vector<2x320xf32> to vector<2x320xbf16>
    %cst_14 = arith.constant dense<0.000000e+00> : vector<2x128xf32>
    %69 = tpu.matmul %68, %65, %cst_14 {dimension_numbers = #tpu.dot_dimension_numbers<[1], [0], [0], [1], [0, 0, 1, 1], [], []>} : vector<2x320xbf16>, vector<320x128xbf16>, vector<2x128xf32> -> vector<2x128xf32>
    %70 = vector.broadcast %7 : vector<1x128xf32> to vector<2x128xf32>
    %71 = arith.addf %69, %70 : vector<2x128xf32>
    %72 = arith.truncf %71 : vector<2x128xf32> to vector<2x128xbf16>
    %cst_15 = arith.constant dense<0.000000e+00> : vector<2x128xf32>
    %73 = tpu.matmul %72, %66, %cst_15 {dimension_numbers = #tpu.dot_dimension_numbers<[1], [0], [0], [1], [0, 0, 1, 1], [], []>} : vector<2x128xbf16>, vector<128x128xbf16>, vector<2x128xf32> -> vector<2x128xf32>
    %74 = vector.broadcast %8 : vector<1x128xf32> to vector<2x128xf32>
    %75 = arith.addf %73, %74 : vector<2x128xf32>
    %76 = arith.truncf %75 : vector<2x128xf32> to vector<2x128xbf16>
    %cst_16 = arith.constant dense<0.000000e+00> : vector<2x128xf32>
    %77 = tpu.matmul %76, %67, %cst_16 {dimension_numbers = #tpu.dot_dimension_numbers<[1], [0], [0], [1], [0, 0, 1, 1], [], []>} : vector<2x128xbf16>, vector<128x128xbf16>, vector<2x128xf32> -> vector<2x128xf32>
    %78 = vector.broadcast %9 : vector<1x128xf32> to vector<2x128xf32>
    %79 = arith.addf %77, %78 : vector<2x128xf32>
    %c0_17 = arith.constant 0 : index
    %c0_18 = arith.constant 0 : index
    %80 = vector.load %arg4[%c0_17, %c0_18] : memref<2x128xf32, #tpu.memory_space<vmem>>, vector<2x128xf32>
    tpu.vector_store %arg4[%c0_17, %c0_18], %79 {strides = array<i32>} : memref<2x128xf32, #tpu.memory_space<vmem>>, vector<2x128xf32>,
    return
  }
}

</mosaic_0001>

<bundles_post_ra>
// kernel: tpu_custom_call.1
= control target key start
LH: loop header
LB: loop body
LE: loop exit
PB: predicated region body
PF: predicated region fallthrough
CT: control target
= control target key end

     0   :  { %vm313_vm0 = vcmask 326656   ;;  %vm320_vm1 = vcmask 1043456   ;;  %s3151_s0 = inlined_call_operand.vmem [shape: bf16[24,168], index: 0, kind: input, shape index: {}]   ;;  %s3152_s1 = inlined_call_operand.vmem [shape: bf16[168,480], index: 1, kind: input, shape index: {}]   ;;  %s3153_s2 = inlined_call_operand.vmem [shape: bf16[1176,160], index: 2, kind: input, shape index: {}]   ;;  %s3154_s3 = inlined_call_operand.vmem [shape: f32[10,512], index: 3, kind: input, shape index: {}]   ;;  %s3155_s4 = inlined_call_operand.hbm [shape: f32[2,128], index: 4, kind: output, shape index: {}]  }
   0x1   :  { %v2208_v0 = vld [vmem:[%s3152_s1 + $0xec] ss:$16 sps:$4 sm:$0xff]   ;;  %v2210_v1 = vld [vmem:[%s3152_s1 + $0xe8] ss:$16 sps:$4 sm:$0xff]   ;;  %v2220_v5 = vld [vmem:[%s3152_s1 + $0xe4] ss:$16 sps:$4 sm:$0xff]  }
   0x2   :  { %384 = vmatprep.subr.bf16.mxu1 %v2208_v0  ;;  %v2211_v2 = vld [vmem:[%s3152_s1 + $0xcc] ss:$16 sps:$4 sm:$0xff]   ;;  %v2213_v3 = vld [vmem:[%s3152_s1 + $0xc8] ss:$16 sps:$4 sm:$0xff]   ;;  %v2222_v6 = vld [vmem:[%s3152_s1 + $0xe0] ss:$16 sps:$4 sm:$0xff]   ;;  %333 = vmatprep.subr.bf16.mxu0 %v2220_v5 }
   0x3   :  { %385 = vmatpush1.bf16.msra.mxu1 %v2210_v1  ;;  %v2214_v4 = vld [vmem:[%s3152_s1 + $0xac] ss:$16 sps:$4 sm:$0xff]   ;;  %v2216_v7 = vld [vmem:[%s3152_s1 + $0xa8] ss:$16 sps:$4 sm:$0xff]   ;;  %v2226_v9 = vld [vmem:[%s3152_s1 + $0xc4] ss:$16 sps:$4 sm:$0xff]   ;;  %334 = vmatpush1.bf16.msra.mxu0 %v2222_v6 }
   0x4   :  { %386 = vmatprep.subr.bf16.mxu1 %v2211_v2  ;;  %v2217_v8 = vld [vmem:[%s3152_s1 + $0x8c] ss:$16 sps:$4 sm:$0xff]   ;;  %v2228_v10 = vld [vmem:[%s3152_s1 + $0xc0] ss:$16 sps:$4 sm:$0xff]   ;;  %335 = vmatprep.subr.bf16.mxu0 %v2226_v9  ;;  %v2219_v11 = vld [vmem:[%s3152_s1 + $0x88] ss:$16 sps:$4 sm:$0xff]  }
   0x5   :  { %v2232_v12 = vld [vmem:[%s3152_s1 + $0xa4] ss:$16 sps:$4 sm:$0xff]   ;;  %v2223_v13 = vld [vmem:[%s3152_s1 + $0x6c] ss:$16 sps:$4 sm:$0xff]   ;;  %v2234_v14 = vld [vmem:[%s3152_s1 + $0xa0] ss:$16 sps:$4 sm:$0xff]  }
   0x6   :  { %v2238_v15 = vld [vmem:[%s3152_s1 + $0x84] ss:$16 sps:$4 sm:$0xff]   ;;  %v2225_v16 = vld [vmem:[%s3152_s1 + $0x68] ss:$16 sps:$4 sm:$0xff]   ;;  %v2229_v17 = vld [vmem:[%s3152_s1 + $0x4c] ss:$16 sps:$4 sm:$0xff]  }
   0x7   :  { %387 = vmatpush1.bf16.msra.mxu1 %v2213_v3  ;;  %336 = vmatpush1.bf16.msra.mxu0 %v2228_v10  ;;  %v2240_v18 = vld [vmem:[%s3152_s1 + $0x80] ss:$16 sps:$4 sm:$0xff]   ;;  %v2244_v19 = vld [vmem:[%s3152_s1 + $0x64] ss:$16 sps:$4 sm:$0xff]   ;;  %v2231_v20 = vld [vmem:[%s3152_s1 + $0x48] ss:$16 sps:$4 sm:$0xff]  }
   0x8   :  { %388 = vmatprep.subr.bf16.mxu1 %v2214_v4  ;;  %337 = vmatprep.subr.bf16.mxu0 %v2232_v12  ;;  %v2235_v21 = vld [vmem:[%s3152_s1 + $0x2c] ss:$16 sps:$4 sm:$0xff]   ;;  %v2246_v22 = vld [vmem:[%s3152_s1 + $0x60] ss:$16 sps:$4 sm:$0xff]   ;;  %v2249_v23 = vld [vmem:[%s3152_s1 + $0x44] ss:$16 sps:$4 sm:$0xff]  }
   0x9   :  { %v2237_v24 = vld [vmem:[%s3152_s1 + $0x28] ss:$16 sps:$4 sm:$0xff]   ;;  %v2241_v25 = vld [vmem:[%s3152_s1 + $0xc] ss:$16 sps:$4 sm:$0xff]   ;;  %v2251_v27 = vld [vmem:[%s3152_s1 + $0x40] ss:$16 sps:$4 sm:$0xff]  }
   0xa   :  { %v71_v26 = vld [vmem:[%s3152_s1 + $0x148] sm:$0xff]  ;;  %v2255_v29 = vld [vmem:[%s3152_s1 + $0x24] ss:$16 sps:$4 sm:$0xff]   ;;  %v2257_v33 = vld [vmem:[%s3152_s1 + $0x20] ss:$16 sps:$4 sm:$0xff]  }
   0xb   :  { %389 = vmatpush1.bf16.msra.mxu1 %v2216_v7  ;;  %338 = vmatpush1.bf16.msra.mxu0 %v2234_v14  ;;  %v2266_v28 = vld [vmem:[%s3151_s0 + $0x4] ss:$8 sps:$4 sm:$0xff]   ;;  %v2243_v30 = vld [vmem:[%s3152_s1 + $0x8] ss:$16 sps:$4 sm:$0xff]   ;;  %v1955_v31 = vcombine.high %v71_v26, %v71_v26  ;;  %v1954_v32 = vcombine.low %v71_v26, %v71_v26  ;;  %v2263_v37 = vld [vmem:[%s3152_s1] ss:$16 sps:$4 sm:$0xff]  }
   0xc   :  { %390 = vmatprep.subr.bf16.mxu1 %v2217_v8  ;;  %339 = vmatprep.subr.bf16.mxu0 %v2238_v15  ;;  %v2261_v34 = vld [vmem:[%s3152_s1 + $0x4] ss:$16 sps:$4 sm:$0xff]   ;;  %v2252_v36 = vld [vmem:[%s3152_s1 + $0x12c] ss:$16 sps:$4 sm:$0xff]   ;;  %v2254_v39 = vld [vmem:[%s3152_s1 + $0x128] ss:$16 sps:$4 sm:$0xff]  }
   0xd   :  { %1960 = vmatprep.mubr.msk.bf16.mxu1 %vm313_vm0, %v2266_v28  ;;  %1957 = vmatprep.mubr.msk.bf16.mxu0 %vm313_vm0, %v2266_v28  ;;  %v70_v35 = vld [vmem:[%s3152_s1 + $0x140] sm:$0xff]  ;;  %v328_v38 = vsel %vm320_vm1, %v1954_v32, 0  ;;  %v2258_v40 = vld [vmem:[%s3152_s1 + $0x10c] ss:$16 sps:$4 sm:$0xff]   ;;  %v2260_v44 = vld [vmem:[%s3152_s1 + $0x108] ss:$16 sps:$4 sm:$0xff]  }
   0xe   :  { %v1953_v41 = vcombine.high %v70_v35, %v70_v35  ;;  %v1952_v42 = vcombine.low %v70_v35, %v70_v35  ;;  %v2269_v43 = vld [vmem:[%s3152_s1 + $0x124] ss:$16 sps:$4 sm:$0xff]   ;;  %v2271_v47 = vld [vmem:[%s3152_s1 + $0x120] ss:$16 sps:$4 sm:$0xff]  }
   0xf   :  { %391 = vmatpush1.bf16.msra.mxu1 %v2219_v11  ;;  %340 = vmatpush1.bf16.msra.mxu0 %v2240_v18  ;;  %v29_v46 = vld [vmem:[%s3151_s0 + $0x10] sm:$0xff]  ;;  %v2264_v48 = vld [vmem:[%s3151_s0] ss:$8 sps:$4 sm:$0xff]  }
  0x10   :  { %392 = vmatprep.subr.bf16.mxu1 %v2223_v13  ;;  %341 = vmatprep.subr.bf16.mxu0 %v2244_v19  ;;  %v322_v45 = vsel %vm320_vm1, %v1952_v42, 0  ;;  %v2274_v49 = vld [vmem:[%s3152_s1 + $0x104] ss:$16 sps:$4 sm:$0xff]   ;;  %v1911_v50 = vcombine.high %v29_v46, %v29_v46  ;;  %v2276_v51 = vld [vmem:[%s3152_s1 + $0x100] ss:$16 sps:$4 sm:$0xff]   ;;  %v1910_v52 = vcombine.low %v29_v46, %v29_v46 }
  0x13   :  { %393 = vmatpush1.bf16.msra.mxu1 %v2225_v16  ;;  %342 = vmatpush1.bf16.msra.mxu0 %v2246_v22 }
  0x14   :  { %394 = vmatprep.subr.bf16.mxu1 %v2229_v17  ;;  %343 = vmatprep.subr.bf16.mxu0 %v2249_v23 }
  0x17   :  { %395 = vmatpush1.bf16.msra.mxu1 %v2231_v20  ;;  %344 = vmatpush1.bf16.msra.mxu0 %v2251_v27 }
  0x18   :  { %396 = vmatprep.subr.bf16.mxu1 %v2235_v21  ;;  %345 = vmatprep.subr.bf16.mxu0 %v2255_v29 }
  0x1b   :  { %397 = vmatpush1.bf16.msra.mxu1 %v2237_v24  ;;  %346 = vmatpush1.bf16.msra.mxu0 %v2257_v33 }
  0x1c   :  { %398 = vmatprep.subr.bf16.mxu1 %v2241_v25  ;;  %347 = vmatprep.subr.bf16.mxu0 %v2261_v34 }
  0x1f   :  { %399 = vmatpush1.bf16.msra.mxu1 %v2243_v30  ;;  %348 = vmatpush1.bf16.msra.mxu0 %v2263_v37 }
  0x20   :  { %1959 = vmatprep.subr.msk.bf16.mxu1 %vm320_vm1, %v1955_v31  ;;  %1956 = vmatprep.subr.msk.bf16.mxu0 %vm320_vm1, %v1953_v41 }
  0x23   :  { %411 = vmatpush2.bf16.msra.mxu1 %v328_v38  ;;  %360 = vmatpush2.bf16.msra.mxu0 %v322_v45 }
  0x24   :  { %412 = vmatprep.subr.bf16.mxu1 %v2252_v36  ;;  %361 = vmatprep.subr.bf16.mxu0 %v2269_v43 }
  0x27   :  { %413 = vmatpush2.bf16.msra.mxu1 %v2254_v39  ;;  %362 = vmatpush2.bf16.msra.mxu0 %v2271_v47 }
  0x28   :  { %414 = vmatprep.subr.bf16.mxu1 %v2258_v40  ;;  %363 = vmatprep.subr.bf16.mxu0 %v2274_v49 }
  0x2b   :  { %415 = vmatpush2.bf16.msra.mxu1 %v2260_v44  ;;  %364 = vmatpush2.bf16.msra.mxu0 %v2276_v51 }
  0x2e   :  { %417 = vmatmul.mubr.bf16.vlgmr.msra.gmra.mxu1 %v2264_v48  ;;  %366 = vmatmul.mubr.bf16.vlgmr.msra.gmra.mxu0 %v2264_v48 }
  0x2f   :  { %1961 = vmatprep.mubr.msk.bf16.mxu1 %vm313_vm0, %v1911_v50  ;;  %1958 = vmatprep.mubr.msk.bf16.mxu0 %vm313_vm0, %v1911_v50 }
  0x36   :  { %427 = vmatmul.mubr.bf16.gmra.mxu1 %v1910_v52  ;;  %376 = vmatmul.mubr.bf16.gmra.mxu0 %v1910_v52 }
  0x37   :  { %9 = vsyncpa [#allocation3], 0  ;;  %v72_v53 = vlaneseq  ;;  %v21_v56 = vld [vmem:[%s3154_s3 + $0x10] sm:$0xff]  ;;  %v22_v58 = vld [vmem:[%s3154_s3 + $0x18] sm:$0xff]  ;;  %s2450_s9 = smov 8   ;;  %vm481_vm2 = vcmask 64512  }
  0x38   :  { %v25_v59 = vld [vmem:[%s3154_s3 + $0x30] sm:$0x3]  ;;  %v26_v0 = vld [vmem:[%s3154_s3 + $0x38] sm:$0x3]  ;;  %v2658_v3 = vld [vmem:[%s3154_s3] sm:$0xff]  ;;  %s2451_s16 = smov 16  }
  0x39   :  { %v2632_v54 = vshrl.u32 %v72_v53, 7  ;;  %v2670_v10 = vld [vmem:[%s3154_s3 + $0x8] sm:$0xff]  ;;  %v23_v12 = vld [vmem:[%s3154_s3 + $0x20] sm:$0x3]  ;;  %vm542_vm3 = vcmask 130048   ;;  %vm592_vm4 = vcmask 1045504  }
  0x3a   :  { %v24_v23 = vld [vmem:[%s3154_s3 + $0x28] sm:$0x3]  ;;  %vm579_vm5 = vcmask 1046528   ;;  %vm605_vm6 = vcmask 1044480   ;;  %s2452_s7 = smov 112   ;;  %s2453_s8 = smov 120  }
  0x3b   :  { %v2635_v55 = vsub.s32 0, %v2632_v54  ;;  %v2641_v57 = vsub.s32 1, %v2632_v54  ;;  %s2455_s10 = smov 104   ;;  %vm626_vm7 = vcmask 982016   ;;  %vm629_vm8 = vcmask 916480   ;;  %s2457_s29 = smov 48  }
  0x3c   :  { %vm632_vm9 = vcmask 850944   ;;  %vm635_vm10 = vcmask 785408   ;;  %vm1101_vm11 = vcmask 719872   ;;  %vm1252_vm12 = vcmask 392192   ;;  %s2461_s18 = smov 32   ;;  %s2462_s19 = smov 80  }
  0x3d   :  { %v83_v60 = vrot.slane %v21_v56, %v2635_v55  ;;  %v87_v61 = vrot.slane %v22_v58, %v2635_v55  ;;  %v446_v62 = vrot.slane %v25_v59, %v2641_v57  ;;  %v450_v5 = vrot.slane %v26_v0, %v2641_v57  ;;  %s2463_s0 = smov [#allocation2]  }
  0x3e   :  { %v75_v9 = vrot.slane %v2658_v3, %v2635_v55  ;;  %v79_v18 = vrot.slane %v2670_v10, %v2635_v55  ;;  %v438_v22 = vrot.slane %v23_v12, %v2641_v57  ;;  %v442_v31 = vrot.slane %v24_v23, %v2641_v57  ;;  %v2288_v12 = vld [vmem:[%s3153_s2 + $0x54] ss:$8 sps:$4 sm:$0xff]   ;;  %v2298_v23 = vld [vmem:[%s3153_s2 + $0x30] ss:$8 sps:$4 sm:$0xff]   ;;  %s1900_s1 = sshll.u32 %s2463_s0, 4  ;;  %s1901_s1 = int_to_ptr.vmem [resolvable:$true] %s1900_s1 }
  0x3f   :  { %vm1303_vm13 = vcmask 648192   ;;  %vm1395_vm14 = vcmask 1041409   ;;  %vm2460_vm15 = vmmov 0   ;;  %vm1419_vm0 = vcmask 654336   ;;  %p2433_p1 = scmp.lt.s32.totalorder %s1901_s1, %s1901_s1 }
  0xee   :  { %v418_v63 = vpop.f32.mrf.mxu1  ;;  %v367_v13 = vpop.f32.mrf.mxu0 }
  0xef   :  { %v419_v1 = vadd.f32 %v418_v63, %v83_v60  ;;  %v368_v21 = vadd.f32 %v367_v13, %v75_v9  ;;  %v2289_v13 = vld [vmem:[%s3153_s2 + $0x160] ss:$8 sps:$4 sm:$0xff]  }
  0xf0   :  { %v420_v2 = vpop.f32.mrf.mxu1  ;;  %v369_v19 = vpop.f32.mrf.mxu0 }
  0xf1   :  { %v421_v4 = vadd.f32 %v420_v2, %v87_v61  ;;  %v2661_v6 = vmul.f32 %v446_v62, %v419_v1  ;;  %v370_v30 = vadd.f32 %v369_v19, %v79_v18  ;;  %v2689_v33 = vmul.f32 %v438_v22, %v368_v21  ;;  %v2292_v19 = vld [vmem:[%s3153_s2 + $0x40] ss:$8 sps:$4 sm:$0xff]  }
  0xf2   :  { %v422_v7 = vpop.f32.mrf.mxu1  ;;  %v371_v25 = vpop.f32.mrf.mxu0  ;;  %v2301_v21 = vld [vmem:[%s3153_s2 + $0x140] ss:$8 sps:$4 sm:$0xff]  }
  0xf3   :  { %v423_v8 = vadd.f32 %v422_v7, %v83_v60  ;;  %497 = vrot.lane.b32.xlu0 %v2661_v6, %s2450_s9  ;;  %v454_v14 = vmul.f32 %v450_v5, %v421_v4  ;;  %v372_v34 = vadd.f32 %v371_v25, %v75_v9  ;;  %v452_v38 = vmul.f32 %v442_v31, %v370_v30  ;;  %v2277_v4 = vld [vmem:[%s3153_s2 + $0x70] ss:$8 sps:$4 sm:$0xff]   ;;  %v2321_v30 = vld [vmem:[%s3153_s2 + $0x114] ss:$8 sps:$4 sm:$0xff]  }
  0xf4   :  { %v424_v11 = vpop.f32.mrf.mxu1  ;;  %v373_v32 = vpop.f32.mrf.mxu0  ;;  %v2283_v7 = vld [vmem:[%s3153_s2 + $0x170] ss:$8 sps:$4 sm:$0xff]  }
  0xf5   :  { %v425_v15 = vadd.f32 %v424_v11, %v87_v61  ;;  %v2675_v16 = vmul.f32 %v446_v62, %v423_v8  ;;  %v2692_v40 = vmul.f32 %v438_v22, %v372_v34  ;;  %v374_v41 = vadd.f32 %v373_v32, %v79_v18  ;;  %v2285_v8 = vld [vmem:[%s3153_s2 + $0x174] ss:$8 sps:$4 sm:$0xff]   ;;  %v2291_v11 = vld [vmem:[%s3153_s2 + $0x164] ss:$8 sps:$4 sm:$0xff]   ;;  %v2307_v25 = vld [vmem:[%s3153_s2 + $0x130] ss:$8 sps:$4 sm:$0xff]  }
  0xf6   :  { %v428_v17 = vpop.f32.mrf.mxu1  ;;  %v377_v36 = vpop.f32.mrf.mxu0  ;;  %1154 = vmatprep.subr.bf16.mxu1 %v2285_v8  ;;  %v2318_v32 = vld [vmem:[%s3153_s2 + $0x4] ss:$8 sps:$4 sm:$0xff]   ;;  %v2319_v34 = vld [vmem:[%s3153_s2 + $0x110] ss:$8 sps:$4 sm:$0xff]  }
  0xf7   :  { %v429_v20 = vadd.f32 %v428_v17, %v83_v60  ;;  %501 = vrot.lane.b32.xlu1 %v2675_v16, %s2450_s9  ;;  %499 = vrot.lane.b32.xlu0 %v454_v14, %s2450_s9  ;;  %v458_v26 = vmul.f32 %v450_v5, %v425_v15  ;;  %v378_v42 = vadd.f32 %v377_v36, %v75_v9  ;;  %v2280_v9 = vld [vmem:[%s3153_s2 + $0x60] ss:$8 sps:$4 sm:$0xff]   ;;  %v2297_v14 = vld [vmem:[%s3153_s2 + $0x154] ss:$8 sps:$4 sm:$0xff]  }
  0xf8   :  { %v430_v24 = vpop.f32.mrf.mxu1  ;;  %v379_v39 = vpop.f32.mrf.mxu0  ;;  %v456_v45 = vmul.f32 %v442_v31, %v374_v41  ;;  %1155 = vmatpush1.bf16.msra.mxu1 %v2283_v7  ;;  %v2286_v15 = vld [vmem:[%s3153_s2 + $0x50] ss:$8 sps:$4 sm:$0xff]   ;;  %v2316_v36 = vld [vmem:[%s3153_s2] ss:$8 sps:$4 sm:$0xff]  }
  0xf9   :  { %v461_v27 = vmul.f32 %v446_v62, %v429_v20  ;;  %v431_v28 = vadd.f32 %v430_v24, %v87_v61  ;;  %v2697_v46 = vmul.f32 %v438_v22, %v378_v42  ;;  %v380_v47 = vadd.f32 %v379_v39, %v79_v18  ;;  %1156 = vmatprep.subr.bf16.mxu1 %v2291_v11  ;;  %v2295_v17 = vld [vmem:[%s3153_s2 + $0x150] ss:$8 sps:$4 sm:$0xff]   ;;  %v2303_v18 = vld [vmem:[%s3153_s2 + $0x144] ss:$8 sps:$4 sm:$0xff]   ;;  %v2300_v20 = vld [vmem:[%s3153_s2 + $0x34] ss:$8 sps:$4 sm:$0xff]  }
  0xfa   :  { %v432_v29 = vpop.f32.mrf.mxu1  ;;  %v381_v43 = vpop.f32.mrf.mxu0  ;;  %v2309_v22 = vld [vmem:[%s3153_s2 + $0x134] ss:$8 sps:$4 sm:$0xff]   ;;  %v2306_v24 = vld [vmem:[%s3153_s2 + $0x24] ss:$8 sps:$4 sm:$0xff]   ;;  %v2322_v41 = vld [vmem:[%s3153_s2 + $0xf0] ss:$8 sps:$4 sm:$0xff]  }
  0xfb   :  { %503 = vrot.lane.b32.xlu1 %v458_v26, %s2450_s9  ;;  %505 = vrot.lane.b32.xlu0 %v461_v27, %s2450_s9  ;;  %v462_v37 = vmul.f32 %v450_v5, %v431_v28  ;;  %v460_v48 = vmul.f32 %v442_v31, %v380_v47  ;;  %v2279_v5 = vld [vmem:[%s3153_s2 + $0x74] ss:$8 sps:$4 sm:$0xff]   ;;  %v2315_v26 = vld [vmem:[%s3153_s2 + $0x124] ss:$8 sps:$4 sm:$0xff]  }
  0xfc   :  { %v433_v35 = vpop.f32.mrf.mxu1  ;;  %v382_v44 = vpop.f32.mrf.mxu0  ;;  %1111 = vmatprep.subr.bf16.mxu0 %v2279_v5  ;;  %1157 = vmatpush1.bf16.msra.mxu1 %v2289_v13  ;;  %v2312_v28 = vld [vmem:[%s3153_s2 + $0x14] ss:$8 sps:$4 sm:$0xff]   ;;  %v2313_v29 = vld [vmem:[%s3153_s2 + $0x120] ss:$8 sps:$4 sm:$0xff]   ;;  %v2310_v31 = vld [vmem:[%s3153_s2 + $0x10] ss:$8 sps:$4 sm:$0xff]  }
  0xfd   :  { %1112 = vmatpush1.bf16.msra.mxu0 %v2277_v4  ;;  %1158 = vmatprep.subr.bf16.mxu1 %v2297_v14  ;;  %v2327_v35 = vld [vmem:[%s3153_s2 + $0x104] ss:$8 sps:$4 sm:$0xff]   ;;  %v2333_v39 = vld [vmem:[%s3153_s2 + $0x1f4] ss:$8 sps:$4 sm:$0xff]   ;;  %v2331_v43 = vld [vmem:[%s3153_s2 + $0x1f0] ss:$8 sps:$4 sm:$0xff]  }
  0xfe   :  { %v2330_v42 = vld [vmem:[%s3153_s2 + $0xe4] ss:$8 sps:$4 sm:$0xff]   ;;  %v2336_v47 = vld [vmem:[%s3153_s2 + $0xd4] ss:$8 sps:$4 sm:$0xff]   ;;  %v2361_v4 = vld [vmem:[%s3153_s2 + $0x1a0] ss:$8 sps:$4 sm:$0xff]  }
  0xff   :  { %507 = vrot.lane.b32.xlu1 %v462_v37, %s2450_s9  ;;  %469 = vrot.lane.b32.xlu0 %v2689_v33, %s2450_s9  ;;  %v2324_v37 = vld [vmem:[%s3153_s2 + $0xf4] ss:$8 sps:$4 sm:$0xff]   ;;  %v2339_v44 = vld [vmem:[%s3153_s2 + $0x1e4] ss:$8 sps:$4 sm:$0xff]  }
 0x100   :  { %1159 = vmatpush1.bf16.msra.mxu1 %v2295_v17  ;;  %v2358_v5 = vld [vmem:[%s3153_s2 + $0x90] ss:$8 sps:$4 sm:$0xff]  }
 0x101   :  { %1160 = vmatprep.subr.bf16.mxu1 %v2303_v18 }
 0x103   :  { %471 = vrot.lane.b32.xlu1 %v452_v38, %s2450_s9  ;;  %473 = vrot.lane.b32.xlu0 %v2692_v40, %s2450_s9 }
 0x104   :  { %1161 = vmatpush1.bf16.msra.mxu1 %v2301_v21 }
 0x105   :  { %1162 = vmatprep.subr.bf16.mxu1 %v2309_v22  ;;  %v558_v22 = vrot.slane %v2658_v3, %v2641_v57 }
 0x107   :  { %475 = vrot.lane.b32.xlu1 %v456_v45, %s2450_s9  ;;  %477 = vrot.lane.b32.xlu0 %v2697_v46, %s2450_s9 }
 0x108   :  { %1163 = vmatpush1.bf16.msra.mxu1 %v2307_v25 }
 0x109   :  { %1164 = vmatprep.subr.bf16.mxu1 %v2315_v26 }
 0x10b   :  { %479 = vrot.lane.b32.xlu1 %v460_v48, %s2450_s9  ;;  %s2454_s9 = smov 96  }
 0x10c   :  { %1165 = vmatpush1.bf16.msra.mxu1 %v2313_v29 }
 0x10d   :  { %1166 = vmatprep.subr.bf16.mxu1 %v2321_v30 }
 0x110   :  { %1167 = vmatpush1.bf16.msra.mxu1 %v2319_v34 }
 0x111   :  { %1168 = vmatprep.subr.bf16.mxu1 %v2327_v35 }
 0x165   :  { %v498_v49 = vpop.permute.xlu0 %497 }
 0x166   :  { %v518_v50 = vmax.f32 %v452_v38, %v498_v49  ;;  %v2325_v38 = vld [vmem:[%s3153_s2 + $0x100] ss:$8 sps:$4 sm:$0xff]  }
 0x167   :  { %1169 = vmatpush1.bf16.msra.mxu1 %v2325_v38 }
 0x168   :  { %530 = vrot.lane.b32.xlu0 %v518_v50, %s2451_s16  ;;  %1170 = vmatprep.subr.bf16.mxu1 %v2333_v39  ;;  %v2334_v50 = vld [vmem:[%s3153_s2 + $0xd0] ss:$8 sps:$4 sm:$0xff]  }
 0x169   :  { %v502_v51 = vpop.permute.xlu1 %501  ;;  %v500_v52 = vpop.permute.xlu0 %499 }
 0x16a   :  { %v520_v53 = vmax.f32 %v456_v45, %v502_v51  ;;  %v509_v56 = vsel %vm481_vm2, %v498_v49, %v500_v52  ;;  %v2328_v45 = vld [vmem:[%s3153_s2 + $0xe0] ss:$8 sps:$4 sm:$0xff]   ;;  %v2345_v49 = vld [vmem:[%s3153_s2 + $0x1d4] ss:$8 sps:$4 sm:$0xff]   ;;  %v2343_v52 = vld [vmem:[%s3153_s2 + $0x1d0] ss:$8 sps:$4 sm:$0xff]  }
 0x16b   :  { %v519_v58 = vmax.f32 %v2661_v6, %v509_v56  ;;  %v2282_v6 = vld [vmem:[%s3153_s2 + $0x64] ss:$8 sps:$4 sm:$0xff]   ;;  %1171 = vmatpush2.bf16.msra.mxu1 %v2331_v43  ;;  %v2340_v56 = vld [vmem:[%s3153_s2 + $0xc0] ss:$8 sps:$4 sm:$0xff]  }
 0x16c   :  { %534 = vrot.lane.b32.xlu0 %v520_v53, %s2451_s16  ;;  %1113 = vmatprep.subr.bf16.mxu0 %v2282_v6  ;;  %v2351_v53 = vld [vmem:[%s3153_s2 + $0x1c4] ss:$8 sps:$4 sm:$0xff]  }
 0x16d   :  { %v504_v59 = vpop.permute.xlu1 %503  ;;  %v506_v60 = vpop.permute.xlu0 %505  ;;  %532 = vrot.lane.b32.xlu1 %v519_v58, %s2451_s16  ;;  %1114 = vmatpush1.bf16.msra.mxu0 %v2280_v9  ;;  %v2348_v58 = vld [vmem:[%s3153_s2 + $0xb4] ss:$8 sps:$4 sm:$0xff]  }
 0x16e   :  { %v510_v61 = vsel %vm481_vm2, %v502_v51, %v504_v59  ;;  %v522_v62 = vmax.f32 %v460_v48, %v506_v60  ;;  %1115 = vmatprep.subr.bf16.mxu0 %v2288_v12  ;;  %v2337_v48 = vld [vmem:[%s3153_s2 + $0x1e0] ss:$8 sps:$4 sm:$0xff]   ;;  %1172 = vmatprep.subr.bf16.mxu1 %v2339_v44  ;;  %v2342_v51 = vld [vmem:[%s3153_s2 + $0xc4] ss:$8 sps:$4 sm:$0xff]   ;;  %v2369_v44 = vld [vmem:[%s3153_s2 + $0x194] ss:$8 sps:$4 sm:$0xff]  }
 0x16f   :  { %v521_v63 = vmax.f32 %v2675_v16, %v510_v61  ;;  %v2294_v16 = vld [vmem:[%s3153_s2 + $0x44] ss:$8 sps:$4 sm:$0xff]   ;;  %1173 = vmatpush2.bf16.msra.mxu1 %v2337_v48  ;;  %v2349_v59 = vld [vmem:[%s3153_s2 + $0x1c0] ss:$8 sps:$4 sm:$0xff]   ;;  %v2346_v61 = vld [vmem:[%s3153_s2 + $0xb0] ss:$8 sps:$4 sm:$0xff]  }
 0x170   :  { %538 = vrot.lane.b32.xlu0 %v522_v62, %s2451_s16  ;;  %1174 = vmatprep.subr.bf16.mxu1 %v2345_v49  ;;  %v2354_v62 = vld [vmem:[%s3153_s2 + $0xa4] ss:$8 sps:$4 sm:$0xff]   ;;  %v717_v49 = vld [vmem:[%s3153_s2 + $0x250] sm:$0xff] }
 0x171   :  { %v508_v0 = vpop.permute.xlu1 %507  ;;  %536 = vrot.lane.b32.xlu1 %v521_v63, %s2451_s16  ;;  %1116 = vmatpush1.bf16.msra.mxu0 %v2286_v15  ;;  %v2355_v63 = vld [vmem:[%s3153_s2 + $0x1b0] ss:$8 sps:$4 sm:$0xff]   ;;  %v470_v6 = vpop.permute.xlu0 %469 }
 0x172   :  { %v511_v1 = vsel %vm481_vm2, %v506_v60, %v508_v0  ;;  %1117 = vmatprep.subr.bf16.mxu0 %v2294_v16  ;;  %v2357_v60 = vld [vmem:[%s3153_s2 + $0x1b4] ss:$8 sps:$4 sm:$0xff]   ;;  %v2363_v0 = vld [vmem:[%s3153_s2 + $0x1a4] ss:$8 sps:$4 sm:$0xff]   ;;  %v564_v16 = vsub.s32 2, %v2632_v54 }
 0x173   :  { %v523_v2 = vmax.f32 %v461_v27, %v511_v1  ;;  %v2304_v27 = vld [vmem:[%s3153_s2 + $0x20] ss:$8 sps:$4 sm:$0xff]   ;;  %1175 = vmatpush2.bf16.msra.mxu1 %v2343_v52  ;;  %v2037_v52 = vcombine.high %v717_v49, %v717_v49 }
 0x174   :  { %1176 = vmatprep.subr.bf16.mxu1 %v2351_v53  ;;  %v2352_v1 = vld [vmem:[%s3153_s2 + $0xa0] ss:$8 sps:$4 sm:$0xff]   ;;  %v565_v25 = vrot.slane %v2658_v3, %v564_v16 }
 0x175   :  { %540 = vrot.lane.b32.xlu1 %v523_v2, %s2451_s16  ;;  %1118 = vmatpush1.bf16.msra.mxu0 %v2292_v19  ;;  %v2360_v2 = vld [vmem:[%s3153_s2 + $0x94] ss:$8 sps:$4 sm:$0xff]   ;;  %v472_v7 = vpop.permute.xlu1 %471  ;;  %v474_v8 = vpop.permute.xlu0 %473 }
 0x176   :  { %1119 = vmatprep.subr.bf16.mxu0 %v2300_v20  ;;  %v482_v14 = vsel %vm481_vm2, %v470_v6, %v472_v7 }
 0x177   :  { %1177 = vmatpush2.bf16.msra.mxu1 %v2349_v59  ;;  %v488_v15 = vmax.f32 %v2689_v33, %v482_v14 }
 0x178   :  { %1178 = vmatprep.subr.bf16.mxu1 %v2357_v60  ;;  %v2373_v60 = vld [vmem:[%s3153_s2 + $0x184] ss:$8 sps:$4 sm:$0xff]  }
 0x179   :  { %1120 = vmatpush1.bf16.msra.mxu0 %v2298_v23  ;;  %v476_v9 = vpop.permute.xlu1 %475  ;;  %v478_v11 = vpop.permute.xlu0 %477 }
 0x17a   :  { %1121 = vmatprep.subr.bf16.mxu0 %v2306_v24  ;;  %v483_v18 = vsel %vm481_vm2, %v474_v8, %v476_v9 }
 0x17b   :  { %1179 = vmatpush2.bf16.msra.mxu1 %v2355_v63  ;;  %v489_v23 = vmax.f32 %v2692_v40, %v483_v18 }
 0x17c   :  { %1180 = vmatprep.subr.bf16.mxu1 %v2363_v0 }
 0x17d   :  { %1122 = vmatpush1.bf16.msra.mxu0 %v2304_v27  ;;  %v480_v12 = vpop.permute.xlu1 %479 }
 0x17e   :  { %1123 = vmatprep.subr.bf16.mxu0 %v2312_v28  ;;  %v484_v33 = vsel %vm481_vm2, %v478_v11, %v480_v12  ;;  %vm1623_vm2 = vcmask 523264  }
 0x17f   :  { %1181 = vmatpush2.bf16.msra.mxu1 %v2361_v4  ;;  %v490_v30 = vmax.f32 %v2697_v46, %v484_v33  ;;  %v2364_v46 = vld [vmem:[%s3153_s2 + $0x80] ss:$8 sps:$4 sm:$0xff]  }
 0x180   :  { %1182 = vmatprep.subr.bf16.mxu1 %v2369_v44  ;;  %v2375_v44 = vld [vmem:[%s3153_s2 + $0x240] ss:$8 sps:$4 sm:$0xff]  }
 0x181   :  { %1124 = vmatpush1.bf16.msra.mxu0 %v2310_v31 }
 0x182   :  { %1125 = vmatprep.subr.bf16.mxu0 %v2318_v32 }
 0x185   :  { %1126 = vmatpush1.bf16.msra.mxu0 %v2316_v36 }
 0x186   :  { %1127 = vmatprep.subr.bf16.mxu0 %v2324_v37 }
 0x189   :  { %1128 = vmatpush2.bf16.msra.mxu0 %v2322_v41 }
 0x18a   :  { %1129 = vmatprep.subr.bf16.mxu0 %v2330_v42  ;;  %v2366_v42 = vld [vmem:[%s3153_s2 + $0x84] ss:$8 sps:$4 sm:$0xff]  }
 0x18d   :  { %1130 = vmatpush2.bf16.msra.mxu0 %v2328_v45  ;;  %v2367_v45 = vld [vmem:[%s3153_s2 + $0x190] ss:$8 sps:$4 sm:$0xff]  }
 0x18e   :  { %1131 = vmatprep.subr.bf16.mxu0 %v2336_v47  ;;  %1183 = vmatpush2.bf16.msra.mxu1 %v2367_v45  ;;  %v2456_v45 = vmov 0  }
 0x18f   :  { %1184 = vmatprep.subr.bf16.mxu1 %v2373_v60 }
 0x191   :  { %1132 = vmatpush2.bf16.msra.mxu0 %v2334_v50 }
 0x192   :  { %1133 = vmatprep.subr.bf16.mxu0 %v2342_v51 }
 0x195   :  { %1134 = vmatpush2.bf16.msra.mxu0 %v2340_v56 }
 0x196   :  { %1135 = vmatprep.subr.bf16.mxu0 %v2348_v58 }
 0x199   :  { %1136 = vmatpush2.bf16.msra.mxu0 %v2346_v61  ;;  %v2371_v61 = vld [vmem:[%s3153_s2 + $0x180] ss:$8 sps:$4 sm:$0xff]  }
 0x19a   :  { %1137 = vmatprep.subr.bf16.mxu0 %v2354_v62  ;;  %1185 = vmatpush2.bf16.msra.mxu1 %v2371_v61 }
 0x19d   :  { %1138 = vmatpush2.bf16.msra.mxu0 %v2352_v1 }
 0x19e   :  { %1139 = vmatprep.subr.bf16.mxu0 %v2360_v2 }
 0x1a1   :  { %1140 = vmatpush2.bf16.msra.mxu0 %v2358_v5 }
 0x1a2   :  { %1141 = vmatprep.subr.bf16.mxu0 %v2366_v42 }
 0x1a5   :  { %1142 = vmatpush2.bf16.msra.mxu0 %v2364_v46 }
 0x1a6   :  { %2038 = vmatprep.subr.msk.bf16.mxu0 %vm320_vm1, %v2037_v52  ;;  %v2386_v52 = vld [vmem:[%s3153_s2 + $0x214] ss:$8 sps:$4 sm:$0xff]  }
 0x1da   :  { %v531_v13 = vpop.permute.xlu0 %530 }
 0x1de   :  { %v535_v20 = vpop.permute.xlu0 %534 }
 0x1df   :  { %v533_v17 = vpop.permute.xlu1 %532 }
 0x1e0   :  { %v543_v19 = vsel %vm542_vm3, %v531_v13, %v533_v17 }
 0x1e1   :  { %v549_v21 = vmax.f32 %v488_v15, %v543_v19 }
 0x1e2   :  { %v539_v32 = vpop.permute.xlu0 %538 }
 0x1e3   :  { %v552_v24 = vmax.f32 %v549_v21, 0.0  ;;  %v537_v26 = vpop.permute.xlu1 %536 }
 0x1e4   :  { %v544_v27 = vsel %vm542_vm3, %v535_v20, %v537_v26  ;;  %v2036_v20 = vcombine.low %v717_v49, %v717_v49  ;;  %v2378_v49 = vld [vmem:[%s3153_s2 + $0x230] ss:$8 sps:$4 sm:$0xff]  }
 0x1e5   :  { %v559_v28 = vmul.f32 %v558_v22, %v552_v24  ;;  %v550_v29 = vmax.f32 %v489_v23, %v544_v27 }
 0x1e6   :  { %v1106_v33 = vsel %vm320_vm1, %v2036_v20, 0  ;;  %vm1421_vm1 = vcmask 261120  }
 0x1e7   :  { %v566_v31 = vadd.f32 %v565_v25, %v559_v28  ;;  %v553_v34 = vmax.f32 %v550_v29, 0.0  ;;  %v541_v35 = vpop.permute.xlu1 %540 }
 0x1e8   :  { %v545_v57 = vsel %vm542_vm3, %v539_v32, %v541_v35 }
 0x1e9   :  { %v572_v36 = vcombine.high %v566_v31, %v566_v31  ;;  %v560_v40 = vmul.f32 %v558_v22, %v553_v34  ;;  %v551_v37 = vmax.f32 %v490_v30, %v545_v57 }
 0x1eb   :  { %v567_v38 = vadd.f32 %v565_v25, %v560_v40  ;;  %v554_v39 = vmax.f32 %v551_v37, 0.0  ;;  %v2897_v41 = vcombine.low %v566_v31, %v572_v36 }
 0x1ed   :  { %v561_v43 = vmul.f32 %v558_v22, %v554_v39  ;;  %v573_v48 = vcombine.high %v567_v38, %v567_v38  ;;  %v593_v50 = vrot.slane %v2897_v41, 2  ;;  %v594_v51 = vrot.slane %v567_v38, 2 }
 0x1ee   :  { %v580_v58 = vrot.slane %v2897_v41, 1  ;;  %v581_v59 = vrot.slane %v567_v38, 1  ;;  %v606_v4 = vrot.slane %v2897_v41, 3  ;;  %v607_v11 = vrot.slane %v567_v38, 3 }
 0x1ef   :  { %v568_v47 = vadd.f32 %v565_v25, %v561_v43  ;;  %v595_v2 = vsel %vm592_vm4, %v593_v50, %v594_v51  ;;  %v618_v16 = vcombine.low %v572_v36, %v567_v38  ;;  %v2377_v38 = vld [vmem:[%s3153_s2 + $0x244] ss:$8 sps:$4 sm:$0xff]   ;;  %v2381_v51 = vld [vmem:[%s3153_s2 + $0x220] ss:$8 sps:$4 sm:$0xff]  }
 0x1f0   :  { %v582_v8 = vsel %vm579_vm5, %v580_v58, %v581_v59  ;;  %v608_v17 = vsel %vm605_vm6, %v606_v4, %v607_v11  ;;  %v2383_v50 = vld [vmem:[%s3153_s2 + $0x224] ss:$8 sps:$4 sm:$0xff]   ;;  %v2387_v58 = vld [vmem:[%s3153_s2 + $0x200] ss:$8 sps:$4 sm:$0xff]  }
 0x1f1   :  { %v574_v53 = vcombine.high %v568_v47, %v568_v47  ;;  %v576_v56 = vcombine.low %v573_v48, %v568_v47  ;;  %v2380_v48 = vld [vmem:[%s3153_s2 + $0x234] ss:$8 sps:$4 sm:$0xff]  }
 0x1f3   :  { %v596_v62 = vrot.slane %v576_v56, 2  ;;  %v597_v63 = vrot.slane %v574_v53, 2  ;;  %v583_v0 = vrot.slane %v576_v56, 1  ;;  %v584_v1 = vrot.slane %v574_v53, 1 }
 0x1f4   :  { %v609_v5 = vrot.slane %v576_v56, 3  ;;  %v610_v6 = vrot.slane %v574_v53, 3  ;;  %v619_v14 = vcombine.low %v568_v47, %v574_v53  ;;  %v2384_v53 = vld [vmem:[%s3153_s2 + $0x210] ss:$8 sps:$4 sm:$0xff]  }
 0x1f5   :  { %v598_v7 = vsel %vm592_vm4, %v596_v62, %v597_v63  ;;  %v585_v9 = vsel %vm579_vm5, %v583_v0, %v584_v1  ;;  %v720_v1 = vsub.s32 3, %v2632_v54 }
 0x1f6   :  { %v2193_v12 = vpack.i.bf16 %v598_v7, %v595_v2  ;;  %v2188_v13 = vpack.i.bf16 %v585_v9, %v582_v8  ;;  %v611_v15 = vsel %vm605_vm6, %v609_v5, %v610_v6  ;;  %v2203_v18 = vpack.i.bf16 %v619_v14, %v618_v16 }
 0x1f7   :  { %v2198_v19 = vpack.i.bf16 %v611_v15, %v608_v17  ;;  %v721_v5 = vrot.slane %v2658_v3, %v720_v1  ;;  %v725_v7 = vrot.slane %v2670_v10, %v720_v1  ;;  %v2390_v10 = vld [vmem:[%s3153_s2 + $0x348] ss:$8 sps:$4 sm:$0xff]  }
 0x1f8   :  { %2194 = vrot.lane.b32.xlu1 %v2193_v12, %s2452_s7  ;;  %2189 = vrot.lane.b32.xlu0 %v2188_v13, %s2453_s8 }
 0x1f9   :  { %2077 = vmatprep.subr.bf16.mxu1 %v2390_v10 }
 0x1fc   :  { %2204 = vrot.lane.b32.xlu1 %v2203_v18, %s2454_s9  ;;  %2199 = vrot.lane.b32.xlu0 %v2198_v19, %s2455_s10 }
 0x26a   :  { %v2195_v21 = vpop.permute.xlu1 %2194  ;;  %v2190_v22 = vpop.permute.xlu0 %2189 }
 0x26b   :  { %v2197_v23 = vunpack.i.h.bf16 %v2195_v21  ;;  %v2196_v24 = vunpack.i.l.bf16 %v2195_v21  ;;  %v2192_v25 = vunpack.i.h.bf16 %v2190_v22  ;;  %v2191_v26 = vunpack.i.l.bf16 %v2190_v22 }
 0x26d   :  { %v628_v27 = vsel %vm626_vm7, %v576_v56, %v2192_v25  ;;  %v627_v28 = vsel %vm626_vm7, %v2897_v41, %v2191_v26  ;;  %v630_v29 = vsel %vm629_vm8, %v2191_v26, %v2196_v24  ;;  %v631_v30 = vsel %vm629_vm8, %v2192_v25, %v2197_v23  ;;  %v2389_v56 = vld [vmem:[%s3153_s2 + $0x204] ss:$8 sps:$4 sm:$0xff]   ;;  %v2391_v25 = vld [vmem:[%s3153_s2 + $0x2c8] ss:$8 sps:$4 sm:$0xff]   ;;  %v2392_v26 = vld [vmem:[%s3153_s2 + $0x338] ss:$8 sps:$4 sm:$0xff]  }
 0x26e   :  { %v638_v31 = vpack.c.bf16 %v628_v27, %v627_v28  ;;  %v2205_v32 = vpop.permute.xlu1 %2204  ;;  %v2200_v34 = vpop.permute.xlu0 %2199  ;;  %v639_v35 = vpack.c.bf16 %v631_v30, %v630_v29  ;;  %v2458_v27 = vmov 0.0   ;;  %v2398_v28 = vld [vmem:[%s3153_s2 + $0x388] ss:$8 sps:$4 sm:$0xff]   ;;  %v2401_v30 = vld [vmem:[%s3153_s2 + $0x378] ss:$8 sps:$4 sm:$0xff]  }
 0x26f   :  { %v2207_v57 = vunpack.i.h.bf16 %v2205_v32  ;;  %v2206_v36 = vunpack.i.l.bf16 %v2205_v32  ;;  %v2202_v40 = vunpack.i.h.bf16 %v2200_v34  ;;  %v2201_v37 = vunpack.i.l.bf16 %v2200_v34  ;;  %v2394_v29 = vld [vmem:[%s3153_s2 + $0x328] ss:$8 sps:$4 sm:$0xff]   ;;  %v2396_v32 = vld [vmem:[%s3153_s2 + $0x318] ss:$8 sps:$4 sm:$0xff]  }
 0x270   :  { %1143 = vmatprep.mubr.bf16.mxu0 %v639_v35  ;;  %v2404_v34 = vld [vmem:[%s3153_s2 + $0x368] ss:$8 sps:$4 sm:$0xff]   ;;  %v2397_v35 = vld [vmem:[%s3153_s2 + $0x298] ss:$8 sps:$4 sm:$0xff]  }
 0x271   :  { %v634_v39 = vsel %vm632_vm9, %v2197_v23, %v2202_v40  ;;  %v633_v41 = vsel %vm632_vm9, %v2196_v24, %v2201_v37  ;;  %1144 = vmatmul.mubr.bf16.vlgmr.msra.gmra.mxu0 %v638_v31  ;;  %v636_v42 = vsel %vm635_vm10, %v2201_v37, %v2206_v36  ;;  %v637_v46 = vsel %vm635_vm10, %v2202_v40, %v2207_v57  ;;  %v2395_v31 = vld [vmem:[%s3153_s2 + $0x2a8] ss:$8 sps:$4 sm:$0xff]   ;;  %v2402_v40 = vld [vmem:[%s3153_s2 + $0x2f8] ss:$8 sps:$4 sm:$0xff]  }
 0x272   :  { %v640_v43 = vpack.c.bf16 %v634_v39, %v633_v41  ;;  %1202 = vmatpush1.bf16.msra.mxu0 %v1106_v33  ;;  %1229 = vmatprep.mubr.bf16.mxu0 %v2456_v45  ;;  %v641_v47 = vpack.c.bf16 %v637_v46, %v636_v42  ;;  %v642_v59 = vpack.c.bf16 %v2207_v57, %v2206_v36  ;;  %v2393_v33 = vld [vmem:[%s3153_s2 + $0x2b8] ss:$8 sps:$4 sm:$0xff]   ;;  %v2399_v57 = vld [vmem:[%s3153_s2 + $0x308] ss:$8 sps:$4 sm:$0xff]  }
 0x273   :  { %1203 = vmatprep.subr.bf16.mxu0 %v2377_v38  ;;  %v2400_v36 = vld [vmem:[%s3153_s2 + $0x288] ss:$8 sps:$4 sm:$0xff]   ;;  %v2403_v37 = vld [vmem:[%s3153_s2 + $0x278] ss:$8 sps:$4 sm:$0xff]   ;;  %v2459_v38 = vmov 1983009808  }
 0x274   :  { %1186 = vmatprep.mubr.bf16.mxu1 %v641_v47  ;;  %v1263_v39 = vunpack.c.l.s4 %v2459_v38 }
 0x275   :  { %1187 = vmatmul.mubr.bf16.vlgmr.msra.gmra.mxu1 %v640_v43 }
 0x276   :  { %1204 = vmatpush1.bf16.msra.mxu0 %v2375_v44  ;;  %2078 = vmatpush3.bf16.msra.mxu1 %v2391_v25  ;;  %v1264_v41 = vunpack.c.0.s8 %v1263_v39 }
 0x277   :  { %1205 = vmatprep.subr.bf16.mxu0 %v2380_v48  ;;  %2079 = vmatprep.subr.bf16.mxu1 %v2392_v26 }
 0x278   :  { %v1267_v43 = vsub.s32 %v1264_v41, %v2632_v54 }
 0x27a   :  { %1206 = vmatpush1.bf16.msra.mxu0 %v2378_v49  ;;  %2080 = vmatpush3.bf16.msra.mxu1 %v2393_v33 }
 0x27b   :  { %1207 = vmatprep.subr.bf16.mxu0 %v2383_v50  ;;  %2081 = vmatprep.subr.bf16.mxu1 %v2394_v29 }
 0x27e   :  { %1208 = vmatpush1.bf16.msra.mxu0 %v2381_v51  ;;  %2082 = vmatpush3.bf16.msra.mxu1 %v2395_v31  ;;  %v1370_v51 = vsub.s32 4, %v2632_v54 }
 0x27f   :  { %1209 = vmatprep.subr.bf16.mxu0 %v2386_v52  ;;  %2083 = vmatprep.subr.bf16.mxu1 %v2396_v32  ;;  %v1382_v52 = vsub.s32 5, %v2632_v54 }
 0x282   :  { %1210 = vmatpush1.bf16.msra.mxu0 %v2384_v53  ;;  %2084 = vmatpush3.bf16.msra.mxu1 %v2397_v35 }
 0x283   :  { %1211 = vmatprep.subr.bf16.mxu0 %v2389_v56  ;;  %2085 = vmatprep.subr.bf16.mxu1 %v2399_v57 }
 0x286   :  { %1212 = vmatpush1.bf16.msra.mxu0 %v2387_v58  ;;  %2086 = vmatpush3.bf16.msra.mxu1 %v2400_v36 }
 0x287   :  { %2122 = vmatprep.subr.bf16.mxu0 %v2458_v27  ;;  %2087 = vmatprep.subr.bf16.mxu1 %v2402_v40 }
 0x289   :  { %2039 = vmatmul.mubr.msk.bf16.vlgmr.msra.gmra.mxu0 %vm1101_vm11, %v642_v59 }
 0x28a   :  { %2123 = vmatpush3.bf16.msra.mxu0 %v2398_v28  ;;  %2088 = vmatpush3.bf16.msra.mxu1 %v2403_v37 }
 0x28b   :  { %2124 = vmatprep.subr.bf16.mxu0 %v2458_v27  ;;  %2130 = vmatprep.mubr.msk.bf16.mxu0 %vm2460_vm15, %v2458_v27 }
 0x28e   :  { %2125 = vmatpush3.bf16.msra.mxu0 %v2401_v30 }
 0x28f   :  { %2126 = vmatprep.subr.bf16.mxu0 %v2458_v27 }
 0x292   :  { %2127 = vmatpush3.bf16.msra.mxu0 %v2404_v34 }
 0x293   :  { %2128 = vmatprep.subr.bf16.mxu0 %v2458_v27 }
 0x331   :  { %v1145_v60 = vpop.f32.mrf.mxu0 }
 0x332   :  { %v1146_v15 = vadd.f32 %v1145_v60, %v721_v5 }
 0x333   :  { %v1147_v61 = vpop.f32.mrf.mxu0 }
 0x334   :  { %v1148_v19 = vadd.f32 %v1147_v61, %v725_v7 }
 0x335   :  { %v1188_v62 = vpop.f32.mrf.mxu1  ;;  %v1149_v63 = vpop.f32.mrf.mxu0 }
 0x336   :  { %v1150_v8 = vadd.f32 %v1149_v63, %v721_v5  ;;  %v1189_v20 = vadd.f32 %v1188_v62, %v1146_v15 }
 0x337   :  { %v1190_v0 = vpop.f32.mrf.mxu1  ;;  %v1151_v2 = vpop.f32.mrf.mxu0 }
 0x338   :  { %v1152_v12 = vadd.f32 %v1151_v2, %v725_v7  ;;  %v1191_v22 = vadd.f32 %v1190_v0, %v1148_v19  ;;  %v3022_v7 = vrot.slane %v2658_v3, %v1370_v51 }
 0x339   :  { %v1192_v4 = vpop.f32.mrf.mxu1 }
 0x33a   :  { %v1193_v13 = vadd.f32 %v1192_v4, %v1150_v8  ;;  %v3025_v8 = vrot.slane %v2658_v3, %v1382_v52 }
 0x33b   :  { %v1194_v9 = vpop.f32.mrf.mxu1 }
 0x33c   :  { %v1195_v16 = vadd.f32 %v1194_v9, %v1152_v12 }
 0x349   :  { %v1231_v6 = vpop.f32.mrf.mxu0 }
 0x34a   :  { %v1232_v23 = vadd.f32 %v1231_v6, %v1189_v20 }
 0x34b   :  { %v1233_v11 = vpop.f32.mrf.mxu0 }
 0x34c   :  { %v1234_v24 = vadd.f32 %v1233_v11, %v1191_v22 }
 0x34d   :  { %v1235_v14 = vpop.f32.mrf.mxu0 }
 0x34e   :  { %v1236_v17 = vadd.f32 %v1235_v14, %v1193_v13 }
 0x34f   :  { %v1237_v18 = vpop.f32.mrf.mxu0 }
 0x350   :  { %v1238_v21 = vadd.f32 %v1237_v18, %v1195_v16  ;;  %1248 = vrot.lane.b32.xlu0 %v1236_v17, %s2457_s29 }
 0x352   :  { %1250 = vrot.lane.b32.xlu1 %v1238_v21, %s2457_s29 }
 0x354   :  { %1244 = vrot.lane.b32.xlu0 %v1232_v23, %s2457_s29 }
 0x356   :  { %1246 = vrot.lane.b32.xlu1 %v1234_v24, %s2457_s29 }
 0x3c2   :  { %v1249_v42 = vpop.permute.xlu0 %1248 }
 0x3c4   :  { %v1251_v46 = vpop.permute.xlu1 %1250 }
 0x3c5   :  { %v1254_v44 = vsel %vm1252_vm12, %v1249_v42, %v1251_v46 }
 0x3c6   :  { %v1258_v45 = vmax.f32 %v1236_v17, %v1254_v44  ;;  %v1245_v49 = vpop.permute.xlu0 %1244 }
 0x3c8   :  { %v1278_v47 = vcombine.high %v1258_v45, %v1258_v45  ;;  %v1285_v48 = vrot.slane %v1258_v45, %v1267_v43  ;;  %v1247_v50 = vpop.permute.xlu1 %1246 }
 0x3c9   :  { %v1253_v53 = vsel %vm1252_vm12, %v1245_v49, %v1247_v50  ;;  %v2405_v50 = vld [vmem:[%s3153_s2 + $0x2e8] ss:$8 sps:$4 sm:$0xff]  }
 0x3ca   :  { %v1292_v56 = vrot.slane %v1278_v47, %v1267_v43  ;;  %v1293_v58 = vcombine.high %v1285_v48, %v1285_v48  ;;  %v1332_v59 = vsel %vm1303_vm13, %v1285_v48, -inf  ;;  %v1257_v60 = vmax.f32 %v1232_v23, %v1253_v53  ;;  %2089 = vmatprep.subr.bf16.mxu1 %v2405_v50  ;;  %v2415_v50 = vld [vmem:[%s3153_s2 + $0x3b8] ss:$8 sps:$4 sm:$0xff]  }
 0x3cb   :  { %v1333_v61 = vrot.slane %v1332_v59, 4 }
 0x3cc   :  { %v1294_v62 = vcombine.high %v1292_v56, %v1292_v56  ;;  %v1339_v63 = vsel %vm1303_vm13, %v1293_v58, -inf  ;;  %v1346_v0 = vsel %vm1303_vm13, %v1292_v56, -inf  ;;  %v1261_v1 = vcombine.high %v1257_v60, %v1257_v60  ;;  %v2406_v58 = vld [vmem:[%s3153_s2 + $0x268] ss:$8 sps:$4 sm:$0xff]  }
 0x3cd   :  { %v1334_v2 = vmax.f32 %v1332_v59, %v1333_v61  ;;  %v1340_v4 = vrot.slane %v1339_v63, 4  ;;  %v1347_v5 = vrot.slane %v1346_v0, 4  ;;  %v1268_v6 = vrot.slane %v1257_v60, %v1267_v43  ;;  %2090 = vmatpush3.bf16.msra.mxu1 %v2406_v58  ;;  %v2420_v58 = vld [vmem:[%s3153_s2 + $0x468] ss:$8 sps:$4 sm:$0xff]  }
 0x3ce   :  { %v1353_v9 = vsel %vm1303_vm13, %v1294_v62, -inf  ;;  %v1275_v11 = vrot.slane %v1261_v1, %v1267_v43 }
 0x3cf   :  { %v1335_v12 = vrot.slane %v1334_v2, 2  ;;  %v1341_v13 = vmax.f32 %v1339_v63, %v1340_v4  ;;  %v1348_v14 = vmax.f32 %v1346_v0, %v1347_v5  ;;  %v1354_v15 = vrot.slane %v1353_v9, 4  ;;  %v2407_v4 = vld [vmem:[%s3153_s2 + $0x358] ss:$8 sps:$4 sm:$0xff]  }
 0x3d0   :  { %v1276_v16 = vcombine.high %v1268_v6, %v1268_v6  ;;  %v1277_v17 = vcombine.high %v1275_v11, %v1275_v11  ;;  %v1304_v18 = vsel %vm1303_vm13, %v1268_v6, -inf  ;;  %v1318_v19 = vsel %vm1303_vm13, %v1275_v11, -inf  ;;  %2129 = vmatpush3.bf16.msra.mxu0 %v2407_v4  ;;  %v2426_v4 = vld [vmem:[%s3154_s3] sm:$0xff] }
 0x3d1   :  { %v1336_v20 = vmax.f32 %v1334_v2, %v1335_v12  ;;  %v1342_v21 = vrot.slane %v1341_v13, 2  ;;  %v1349_v22 = vrot.slane %v1348_v14, 2  ;;  %v1355_v23 = vmax.f32 %v1353_v9, %v1354_v15  ;;  %v2408_v12 = vld [vmem:[%s3153_s2 + $0x2d8] ss:$8 sps:$4 sm:$0xff]   ;;  %2154 = vmatprep.subr.bf16.mxu0 %v2458_v27 }
 0x3d2   :  { %v1305_v24 = vrot.slane %v1304_v18, 4  ;;  %v1311_v3 = vsel %vm1303_vm13, %v1276_v16, -inf  ;;  %v1319_v10 = vrot.slane %v1318_v19, 4  ;;  %v1325_v25 = vsel %vm1303_vm13, %v1277_v17, -inf  ;;  %2091 = vmatprep.subr.bf16.mxu1 %v2408_v12 }
 0x3d3   :  { %v1337_v26 = vrot.slane %v1336_v20, 1  ;;  %v1343_v33 = vmax.f32 %v1341_v13, %v1342_v21  ;;  %v1350_v28 = vmax.f32 %v1348_v14, %v1349_v22  ;;  %v1356_v29 = vrot.slane %v1355_v23, 2  ;;  %v2409_v14 = vld [vmem:[%s3153_s2 + $0x258] ss:$8 sps:$4 sm:$0xff]  }
 0x3d4   :  { %v1306_v30 = vmax.f32 %v1304_v18, %v1305_v24  ;;  %v1312_v31 = vrot.slane %v1311_v3, 4  ;;  %v1320_v32 = vmax.f32 %v1318_v19, %v1319_v10  ;;  %v1326_v34 = vrot.slane %v1325_v25, 4  ;;  %2092 = vmatpush3.bf16.msra.mxu1 %v2409_v14 }
 0x3d5   :  { %v1338_v35 = vmax.f32 %v1336_v20, %v1337_v26  ;;  %v1344_v57 = vrot.slane %v1343_v33, 1  ;;  %v1351_v36 = vrot.slane %v1350_v28, 1  ;;  %v1357_v40 = vmax.f32 %v1355_v23, %v1356_v29  ;;  %2134 = vmatprep.subr.bf16.mxu1 %v2458_v27 }
 0x3d6   :  { %v1307_v37 = vrot.slane %v1306_v30, 2  ;;  %v1313_v38 = vmax.f32 %v1311_v3, %v1312_v31  ;;  %v1321_v39 = vrot.slane %v1320_v32, 2  ;;  %v1327_v41 = vmax.f32 %v1325_v25, %v1326_v34 }
 0x3d7   :  { %v1364_v42 = vmax.f32 %v1338_v35, 0.0  ;;  %v1345_v43 = vmax.f32 %v1343_v33, %v1344_v57  ;;  %v1352_v46 = vmax.f32 %v1350_v28, %v1351_v36  ;;  %v1358_v44 = vrot.slane %v1357_v40, 1 }
 0x3d8   :  { %v1308_v45 = vmax.f32 %v1306_v30, %v1307_v37  ;;  %v1314_v47 = vrot.slane %v1313_v38, 2  ;;  %v1322_v48 = vmax.f32 %v1320_v32, %v1321_v39  ;;  %v1328_v49 = vrot.slane %v1327_v41, 2 }
 0x3d9   :  { %v1365_v51 = vmax.f32 %v1345_v43, 0.0  ;;  %v1366_v52 = vmax.f32 %v1352_v46, 0.0  ;;  %v1359_v53 = vmax.f32 %v1357_v40, %v1358_v44  ;;  %v1376_v56 = vmul.f32 %v3022_v7, %v1364_v42 }
 0x3da   :  { %v1309_v59 = vrot.slane %v1308_v45, 1  ;;  %v1315_v60 = vmax.f32 %v1313_v38, %v1314_v47  ;;  %v1323_v61 = vrot.slane %v1322_v48, 1  ;;  %v1329_v62 = vmax.f32 %v1327_v41, %v1328_v49  ;;  %v2412_v47 = vld [vmem:[%s3153_s2 + $0x3e8] ss:$8 sps:$4 sm:$0xff]  }
 0x3db   :  { %v1377_v63 = vmul.f32 %v3022_v7, %v1365_v51  ;;  %v1378_v0 = vmul.f32 %v3022_v7, %v1366_v52  ;;  %v1367_v1 = vmax.f32 %v1359_v53, 0.0  ;;  %v1388_v2 = vadd.f32 %v3025_v8, %v1376_v56  ;;  %v2414_v49 = vld [vmem:[%s3153_s2 + $0x3c8] ss:$8 sps:$4 sm:$0xff]   ;;  %v2417_v52 = vld [vmem:[%s3153_s2 + $0x398] ss:$8 sps:$4 sm:$0xff]  }
 0x3dc   :  { %v1310_v5 = vmax.f32 %v1308_v45, %v1309_v59  ;;  %v1316_v6 = vrot.slane %v1315_v60, 1  ;;  %v1324_v9 = vmax.f32 %v1322_v48, %v1323_v61  ;;  %v1330_v11 = vrot.slane %v1329_v62, 1  ;;  %v2411_v45 = vld [vmem:[%s3153_s2 + $0x3f8] ss:$8 sps:$4 sm:$0xff]   ;;  %v2416_v51 = vld [vmem:[%s3153_s2 + $0x3a8] ss:$8 sps:$4 sm:$0xff]  }
 0x3dd   :  { %v1390_v13 = vadd.f32 %v3025_v8, %v1378_v0  ;;  %v1389_v19 = vadd.f32 %v3025_v8, %v1377_v63  ;;  %v1379_v20 = vmul.f32 %v3022_v7, %v1367_v1  ;;  %v1394_v10 = vrot.slane %v1388_v2, 7  ;;  %v2413_v48 = vld [vmem:[%s3153_s2 + $0x3d8] ss:$8 sps:$4 sm:$0xff]   ;;  %v2418_v53 = vld [vmem:[%s3153_s2 + $0x488] ss:$8 sps:$4 sm:$0xff]  }
 0x3de   :  { %v1360_v15 = vmax.f32 %v1310_v5, 0.0  ;;  %v1317_v16 = vmax.f32 %v1315_v60, %v1316_v6  ;;  %v1362_v17 = vmax.f32 %v1324_v9, 0.0  ;;  %v1331_v18 = vmax.f32 %v1329_v62, %v1330_v11  ;;  %v2419_v56 = vld [vmem:[%s3153_s2 + $0x478] ss:$8 sps:$4 sm:$0xff]   ;;  %v2422_v60 = vld [vmem:[%s3153_s2 + $0x448] ss:$8 sps:$4 sm:$0xff]  }
 0x3df   :  { %v1407_v3 = vrot.slane %v1390_v13, 7  ;;  %v1400_v29 = vrot.slane %v1389_v19, 7  ;;  %v1391_v32 = vadd.f32 %v3025_v8, %v1379_v20  ;;  %v2421_v59 = vld [vmem:[%s3153_s2 + $0x458] ss:$8 sps:$4 sm:$0xff]   ;;  %v2424_v62 = vld [vmem:[%s3153_s2 + $0x428] ss:$8 sps:$4 sm:$0xff]  }
 0x3e0   :  { %v1361_v21 = vmax.f32 %v1317_v16, 0.0  ;;  %v1374_v22 = vmul.f32 %v3022_v7, %v1362_v17  ;;  %v1363_v23 = vmax.f32 %v1331_v18, 0.0  ;;  %v1372_v24 = vmul.f32 %v3022_v7, %v1360_v15  ;;  %v2423_v61 = vld [vmem:[%s3153_s2 + $0x438] ss:$8 sps:$4 sm:$0xff]  }
 0x3e1   :  { %v1414_v57 = vrot.slane %v1391_v32, 7  ;;  %v1501_v63 = vsub.s32 6, %v2632_v54  ;;  %v1710_v18 = vsub.s32 7, %v2632_v54 }
 0x3e2   :  { %v1373_v25 = vmul.f32 %v3022_v7, %v1361_v21  ;;  %v1386_v26 = vadd.f32 %v3025_v8, %v1374_v22  ;;  %v1375_v33 = vmul.f32 %v3022_v7, %v1363_v23  ;;  %v1384_v28 = vadd.f32 %v3025_v8, %v1372_v24 }
 0x3e3   :  { %v1502_v5 = vrot.slane %v2426_v4, %v1501_v63  ;;  %v1711_v19 = vrot.slane %v2426_v4, %v1710_v18 }
 0x3e4   :  { %v1385_v30 = vadd.f32 %v3025_v8, %v1373_v25  ;;  %v1408_v31 = vsel %vm1395_vm14, %v1407_v3, %v1386_v26  ;;  %v1396_v34 = vsel %vm1395_vm14, %v1394_v10, %v1384_v28  ;;  %v1387_v7 = vadd.f32 %v3025_v8, %v1375_v33  ;;  %v2410_v8 = vld [vmem:[%s3153_s2 + $0x408] ss:$8 sps:$4 sm:$0xff]   ;;  %v2427_v10 = vld [vmem:[%s3154_s3 + $0x20] sm:$0x3] }
 0x3e5   :  { %1409 = vrot.lane.b32.xlu1 %v1408_v31, %s2461_s18  ;;  %v1804_v25 = vrot.slane %v2427_v10, %v2635_v55 }
 0x3e6   :  { %v1401_v35 = vsel %vm1395_vm14, %v1400_v29, %v1385_v30  ;;  %v1415_v36 = vsel %vm1395_vm14, %v1414_v57, %v1387_v7 }
 0x3e7   :  { %1402 = vrot.lane.b32.xlu0 %v1401_v35, %s2462_s19 }
 0x3eb   :  { %1416 = vrot.lane.b32.xlu0 %v1415_v36, %s2452_s7 }
 0x457   :  { %v1410_v37 = vpop.permute.xlu1 %1409 }
 0x459   :  { %v1403_v40 = vpop.permute.xlu0 %1402 }
 0x45a   :  { %v1420_v38 = vsel %vm1419_vm0, %v1396_v34, %v1403_v40  ;;  %v1422_v39 = vsel %vm1421_vm1, %v1403_v40, %v1410_v37 }
 0x45b   :  { %v1496_v44 = vpack.c.bf16 %v1420_v38, %v1420_v38 }
 0x45d   :  { %v1417_v41 = vpop.permute.xlu0 %1416 }
 0x45e   :  { %v1423_v42 = vsel %vm629_vm8, %v1422_v39, %v1417_v41  ;;  %v1498_v43 = vpack.c.bf16 %v1417_v41, %v1417_v41 }
 0x45f   :  { %v1497_v46 = vpack.c.bf16 %v1423_v42, %v1423_v42 }
 0x460   :  { %2131 = vmatmul.mubr.msk.bf16.vlgmr.msra.gmra.mxu0 %vm1623_vm2, %v1498_v43 }
 0x461   :  { %1659 = vmatprep.mubr.bf16.mxu1 %v1497_v46  ;;  %2170 = vmatprep.mubr.msk.bf16.mxu0 %vm2460_vm15, %v2458_v27 }
 0x462   :  { %1660 = vmatmul.mubr.bf16.vlgmr.msra.gmra.mxu1 %v1496_v44  ;;  %2155 = vmatpush3.bf16.msra.mxu0 %v2418_v53 }
 0x463   :  { %2135 = vmatpush3.bf16.msra.mxu1 %v2410_v8  ;;  %2150 = vmatprep.mubr.msk.bf16.mxu1 %vm2460_vm15, %v2458_v27 }
 0x464   :  { %2136 = vmatprep.subr.bf16.mxu1 %v2458_v27  ;;  %2156 = vmatprep.subr.bf16.mxu0 %v2458_v27 }
 0x466   :  { %2157 = vmatpush3.bf16.msra.mxu0 %v2419_v56 }
 0x467   :  { %2137 = vmatpush3.bf16.msra.mxu1 %v2411_v45  ;;  %2158 = vmatprep.subr.bf16.mxu0 %v2458_v27 }
 0x468   :  { %2138 = vmatprep.subr.bf16.mxu1 %v2458_v27 }
 0x46a   :  { %2159 = vmatpush3.bf16.msra.mxu0 %v2420_v58 }
 0x46b   :  { %2139 = vmatpush3.bf16.msra.mxu1 %v2412_v47  ;;  %2160 = vmatprep.subr.bf16.mxu0 %v2458_v27 }
 0x46c   :  { %2140 = vmatprep.subr.bf16.mxu1 %v2458_v27 }
 0x46e   :  { %2161 = vmatpush3.bf16.msra.mxu0 %v2421_v59 }
 0x46f   :  { %2141 = vmatpush3.bf16.msra.mxu1 %v2413_v48  ;;  %2162 = vmatprep.subr.bf16.mxu0 %v2458_v27 }
 0x470   :  { %2142 = vmatprep.subr.bf16.mxu1 %v2458_v27 }
 0x472   :  { %2163 = vmatpush3.bf16.msra.mxu0 %v2422_v60 }
 0x473   :  { %2143 = vmatpush3.bf16.msra.mxu1 %v2414_v49  ;;  %2164 = vmatprep.subr.bf16.mxu0 %v2458_v27 }
 0x474   :  { %2144 = vmatprep.subr.bf16.mxu1 %v2458_v27 }
 0x476   :  { %2165 = vmatpush3.bf16.msra.mxu0 %v2423_v61 }
 0x477   :  { %2145 = vmatpush3.bf16.msra.mxu1 %v2415_v50  ;;  %2166 = vmatprep.subr.bf16.mxu0 %v2458_v27 }
 0x478   :  { %2146 = vmatprep.subr.bf16.mxu1 %v2458_v27 }
 0x47a   :  { %2167 = vmatpush3.bf16.msra.mxu0 %v2424_v62 }
 0x47b   :  { %2147 = vmatpush3.bf16.msra.mxu1 %v2416_v51  ;;  %2168 = vmatprep.subr.bf16.mxu0 %v2458_v27 }
 0x47c   :  { %2148 = vmatprep.subr.bf16.mxu1 %v2458_v27  ;;  %v2425_v27 = vld [vmem:[%s3153_s2 + $0x418] ss:$8 sps:$4 sm:$0xff]   ;;  %s2428_s2 = scalar_lea.vmem %s1901_s1, 32 }
 0x47d   :  { %p2429_p0 = scmp.ne.s32.totalorder %s1901_s1, %s2428_s2  ;;  %p2434_p2 = scmp.lt.s32.totalorder %s2428_s2, %s2428_s2 }
 0x47e   :  { %2169 = vmatpush3.bf16.msra.mxu0 %v2425_v27 }
 0x47f   :  { %2149 = vmatpush3.bf16.msra.mxu1 %v2417_v52  ;;  %p2435_p3 = por %p2434_p2, %p2433_p1 }
 0x481   :  { %p2436_p4 = pnand %p2435_p3, %p2429_p0 }
 0x520   :  { %v1701_v0 = vpop.f32.mrf.mxu0 }
 0x522   :  { %v2093_v1 = vpop.f32.mrf.mxu1  ;;  %v2132_v2 = vpop.f32.mrf.mxu0 }
 0x524   :  { %v2094_v6 = vpop.f32.mrf.mxu1  ;;  %v1704_v9 = vpop.f32.mrf.mxu0 }
 0x525   :  { %v2095_v11 = vadd.f32 %v2094_v6, %v2093_v1 }
 0x526   :  { %v2096_v12 = vpop.f32.mrf.mxu1  ;;  %v2133_v13 = vpop.f32.mrf.mxu0 }
 0x527   :  { %v1662_v14 = vadd.f32 %v2095_v11, %v1502_v5 }
 0x528   :  { %v2097_v15 = vpop.f32.mrf.mxu1 }
 0x529   :  { %v1702_v16 = vadd.f32 %v1701_v0, %v1662_v14 }
 0x52b   :  { %v1707_v17 = vpack.c.bf16 %v1702_v16, %v1702_v16 }
 0x52d   :  { %2151 = vmatmul.mubr.bf16.vlgmr.msra.gmra.mxu1 %v1707_v17 }
 0x5ed   :  { %v1794_v20 = vpop.f32.mrf.mxu1 }
 0x5ee   :  { %v1795_v21 = vadd.f32 %v1794_v20, %v1711_v19 }
 0x5ef   :  { %v2152_v22 = vpop.f32.mrf.mxu1 }
 0x5f0   :  { %v1800_v23 = vpack.c.bf16 %v1795_v21, %v1795_v21 }
 0x5f1   :  { %v1797_v24 = vpop.f32.mrf.mxu1 }
 0x5f2   :  { %2171 = vmatmul.mubr.bf16.vlgmr.msra.gmra.mxu0 %v1800_v23 }
 0x5f3   :  { %v2153_v3 = vpop.f32.mrf.mxu1 }
 0x6b2   :  { %v1887_v26 = vpop.f32.mrf.mxu0 }
 0x6b3   :  { %v1888_v33 = vadd.f32 %v1887_v26, %v1804_v25 }
 0x6b4   :  { %v2172_v54 = vpop.f32.mrf.mxu0 }
 0x6b5   :  { %1893 = vst [vmem:[#allocation2] sm:$0x3] %v1888_v33 }
 0x6b6   :  { %v1890_v28 = vpop.f32.mrf.mxu0 }
 0x6b7   :  { %2439 = shalt.err (!%p2436_p4)
}
 0x6b8   :  { %1903 = dma.vmem_to_hbm [thread:$0]  %s1901_s1, 32, %s3155_s4, [#allocation3]   ;;  %v2173_v55 = vpop.f32.mrf.mxu0 }
 0x6b9   :  { %2448 = dma.done.wait [#allocation3], 32  }
 0x6ba   :  { %2449 = vsyncadd [#allocation3], 4294967264 }
 0x6bb   :  { %1907 = vsyncpa [#allocation3], 1 }

</bundles_post_ra>
